<compile_context>
chip_gen: v7x
topology: tpu7x:2x2x1
jax: 0.10.0
libtpu: 0.0.40
codegen_flags: <defaults>
</compile_context>

<pallas_src>
import functools

import jax
import jax.numpy as jnp
import numpy as np
from jax.experimental import pallas as pl
from jax.experimental.pallas import tpu as pltpu


def _row_tile(m, target):
    """Largest multiple-of-8 divisor of m that is <= min(target, m // 2).

    Keeps >= 2 grid steps whenever m >= 16 (feeds both v7x TensorCores and
    enables DMA/compute pipelining); falls back to one full-extent block for
    tiny m (block dim == full array dim is always legal).
    """
    if m < 16:
        return m
    cap = min(target, m // 2)
    cap -= cap % 8
    t = cap
    while t >= 8 and m % t:
        t -= 8
    return t if t >= 8 else m


# ----------------------------------------------------------------------------
# Wrapper-side im2col, pool-window major.
#   x: (N, H, W, Cin)  ->  patches: (win*win, N*Ho*Wo, 9*Cin)
# patches[q, n*Ho*Wo + ho*Wo + wo, :] is the 3x3xCin patch of the conv-output
# pixel at position q inside the (win x win) pooling window (ho, wo).
# ----------------------------------------------------------------------------
def _im2col_pool_major(x_nhwc, win):
    N, H, W, C = x_nhwc.shape
    assert H % win == 0 and W % win == 0
    xp = jnp.pad(x_nhwc, ((0, 0), (1, 1), (1, 1), (0, 0)))
    cols = [xp[:, dy:dy + H, dx:dx + W, :] for dy in range(3) for dx in range(3)]
    col = jnp.concatenate(cols, axis=-1)                      # (N, H, W, 9C)
    Ho, Wo = H // win, W // win
    col = col.reshape(N, Ho, win, Wo, win, 9 * C)
    col = col.transpose(2, 4, 0, 1, 3, 5)                     # (win, win, N, Ho, Wo, 9C)
    return col.reshape(win * win, N * Ho * Wo, 9 * C)


# ----------------------------------------------------------------------------
# Fused conv3x3(pad=1) + bias + ReLU + (win x win) pool, one kernel per layer.
# x_ref: (Q, tm, p*K) bf16   w_ref: (p*K, p*Cout) bf16 block-diagonal
# b_ref: (1, p*Cout) f32     o_ref: (tm, p*Cout)  (p*Cout == 128: lane-dense)
# ----------------------------------------------------------------------------
def _conv_pool_kernel(x_ref, w_ref, b_ref, o_ref, *, pool):
    q, tm, kp = x_ref.shape
    # Major-dim collapse (layout preserving): one long MXU stream instead of
    # Q short matmuls with separate fill/drain.
    x = x_ref[...].reshape(q * tm, kp)
    y = jnp.dot(x, w_ref[...], preferred_element_type=jnp.float32)   # (Q*tm, 128)
    b = b_ref[...]
    parts = [y[j * tm:(j + 1) * tm, :] for j in range(q)]
    if pool == "max":
        # relu(maxpool(z + b)) == maxpool(relu(z + b))  (relu monotone, b const)
        while len(parts) > 1:
            parts = [jnp.maximum(parts[i], parts[i + 1]) if i + 1 < len(parts)
                     else parts[i] for i in range(0, len(parts), 2)]
        o_ref[...] = jnp.maximum(parts[0] + b, 0.0).astype(o_ref.dtype)
    else:  # "avg": mean over the window of relu(z + b)
        parts = [jnp.maximum(pp + b, 0.0) for pp in parts]
        while len(parts) > 1:
            parts = [parts[i] + parts[i + 1] if i + 1 < len(parts)
                     else parts[i] for i in range(0, len(parts), 2)]
        o_ref[...] = (parts[0] * (1.0 / q)).astype(o_ref.dtype)


def conv_relu_pool(x_nhwc, w_hwio, b, *, pool, win, out_dtype=jnp.bfloat16):
    N, H, W, Cin = x_nhwc.shape
    Cout = w_hwio.shape[-1]
    Ho, Wo = H // win, W // win
    M = N * Ho * Wo
    Q = win * win
    K = 9 * Cin
    p = max(1, 128 // Cout)              # pooled pixels packed per output row
    assert M % p == 0
    Mp, Kp, Np = M // p, p * K, p * Cout

    # (Q, M, K) -> (Q, M/p, p*K): contiguous reshape, no extra copy.
    patches = _im2col_pool_major(x_nhwc, win).astype(jnp.bfloat16).reshape(Q, Mp, Kp)
    w_mat = w_hwio.reshape(K, Cout).astype(jnp.float32)
    # Block-diagonal fold: output column r*Cout + c <- pixel r, channel c.
    w_fold = jnp.kron(jnp.eye(p, dtype=jnp.float32), w_mat).astype(jnp.bfloat16)
    b_fold = jnp.tile(b.astype(jnp.float32), p).reshape(1, Np)

    tm = _row_tile(Mp, 1024)
    grid = (Mp // tm,)

    kernel = functools.partial(_conv_pool_kernel, pool=pool)
    cost = pl.CostEstimate(
        flops=2 * Q * Mp * Kp * Np,
        transcendentals=0,
        bytes_accessed=(patches.size * 2 + w_fold.size * 2 + b_fold.size * 4
                        + Mp * Np * jnp.dtype(out_dtype).itemsize),
    )

    out = pl.pallas_call(
        kernel,
        out_shape=jax.ShapeDtypeStruct((Mp, Np), out_dtype),
        grid_spec=pltpu.PrefetchScalarGridSpec(
            num_scalar_prefetch=0,
            grid=grid,
            in_specs=[
                pl.BlockSpec((Q, tm, Kp), lambda i: (0, i, 0)),
                pl.BlockSpec((Kp, Np), lambda i: (0, 0)),
                pl.BlockSpec((1, Np), lambda i: (0, 0)),
            ],
            out_specs=pl.BlockSpec((tm, Np), lambda i: (i, 0)),
        ),
        compiler_params=pltpu.CompilerParams(
            dimension_semantics=("parallel",)),
        cost_estimate=cost,
    )(patches, w_fold, b_fold)
    # Each packed row = p consecutive pooled pixels -> contiguous unpack.
    return out.reshape(N, Ho, Wo, Cout)


# ----------------------------------------------------------------------------
# Classifier: Linear(1024,128) + ReLU -> Linear(128,num_classes), one kernel.
# fc1 runs bf16 x bf16 (f32 accumulation); fc2 stays f32.
# ----------------------------------------------------------------------------
def _classifier_kernel(x_ref, w1_ref, b1_ref, w2_ref, b2_ref, o_ref):
    h = jnp.dot(x_ref[...], w1_ref[...],
                preferred_element_type=jnp.float32) + b1_ref[...]
    h = jnp.maximum(h, 0.0)
    o_ref[...] = jnp.dot(h, w2_ref[...],
                         preferred_element_type=jnp.float32) + b2_ref[...]


def classifier(x_flat, w1, b1, w2, b2):
    N, F = x_flat.shape
    H1 = w1.shape[1]
    K = w2.shape[1]
    x16 = x_flat.astype(jnp.bfloat16)
    w1_16 = w1.astype(jnp.bfloat16)
    b1r = b1.reshape(1, H1).astype(jnp.float32)
    w2f = w2.astype(jnp.float32)
    b2r = b2.reshape(1, K).astype(jnp.float32)

    tb = _row_tile(N, 1024)
    cost = pl.CostEstimate(
        flops=2 * N * (F * H1 + H1 * K),
        transcendentals=0,
        bytes_accessed=2 * (N * F + F * H1) + 4 * (H1 + H1 * K + K + N * K),
    )

    return pl.pallas_call(
        _classifier_kernel,
        out_shape=jax.ShapeDtypeStruct((N, K), jnp.float32),
        grid_spec=pltpu.PrefetchScalarGridSpec(
            num_scalar_prefetch=0,
            grid=(N // tb,),
            in_specs=[
                pl.BlockSpec((tb, F), lambda i: (i, 0)),
                pl.BlockSpec((F, H1), lambda i: (0, 0)),
                pl.BlockSpec((1, H1), lambda i: (0, 0)),
                pl.BlockSpec((H1, K), lambda i: (0, 0)),
                pl.BlockSpec((1, K), lambda i: (0, 0)),
            ],
            out_specs=pl.BlockSpec((tb, K), lambda i: (i, 0)),
        ),
        compiler_params=pltpu.CompilerParams(
            dimension_semantics=("parallel",)),
        cost_estimate=cost,
    )(x16, w1_16, b1r, w2f, b2r)


# ----------------------------------------------------------------------------
# Full forward pass (inference mode).
# ----------------------------------------------------------------------------
@jax.jit
def lightweight_cnn_forward(x_nchw, params):
    x = jnp.transpose(x_nchw, (0, 2, 3, 1))                          # NCHW -> NHWC
    x = conv_relu_pool(x, params["w1"], params["b1"], pool="max", win=2)
    x = conv_relu_pool(x, params["w2"], params["b2"], pool="max", win=2)
    # conv3 + ReLU + AdaptiveAvgPool2d((4,4))  (exact when spatial dims % 4 == 0)
    x = conv_relu_pool(x, params["w3"], params["b3"], pool="avg",
                       win=x.shape[1] // 4)
    # Flatten in NHWC order (contiguous) and fold PyTorch's (C,H,W) flatten
    # permutation into fc1's weight instead of transposing activations.
    n, ho, wo, c = x.shape
    x_flat = x.reshape(n, ho * wo * c)
    w1_nhwc = params["fc1_w"].reshape(c, ho, wo, -1).transpose(1, 2, 0, 3) \
                             .reshape(ho * wo * c, -1)
    # Dropout(0.3): identity at inference.
    return classifier(x_flat, w1_nhwc, params["fc1_b"],
                      params["fc2_w"], params["fc2_b"])


# ----------------------------------------------------------------------------
# Pure-JAX f32 reference (for correctness check) — PyTorch-order flatten.
# ----------------------------------------------------------------------------
def reference_forward(x_nchw, p):
    hi = jax.lax.Precision.HIGHEST
    x = jnp.transpose(x_nchw, (0, 2, 3, 1))

    def conv(x, w, b):
        y = jax.lax.conv_general_dilated(
            x, w, (1, 1), "SAME",
            dimension_numbers=("NHWC", "HWIO", "NHWC"), precision=hi)
        return jax.nn.relu(y + b)

    def maxpool(x):
        return jax.lax.reduce_window(x, -jnp.inf, jax.lax.max,
                                     (1, 2, 2, 1), (1, 2, 2, 1), "VALID")

    def avgpool(x, win):
        s = jax.lax.reduce_window(x, 0.0, jax.lax.add,
                                  (1, win, win, 1), (1, win, win, 1), "VALID")
        return s / float(win * win)

    x = conv(x, p["w1"], p["b1"]); x = maxpool(x)
    x = conv(x, p["w2"], p["b2"]); x = maxpool(x)
    x = conv(x, p["w3"], p["b3"]); x = avgpool(x, x.shape[1] // 4)
    x = jnp.transpose(x, (0, 3, 1, 2)).reshape(x.shape[0], -1)   # (C,H,W) flatten
    h = jax.nn.relu(jnp.dot(x, p["fc1_w"], precision=hi) + p["fc1_b"])
    return jnp.dot(h, p["fc2_w"], precision=hi) + p["fc2_b"]


def init_params(key, num_classes=10):
    ks = jax.random.split(key, 10)

    def w(k, shape, fan_in):
        return jax.random.normal(k, shape, jnp.float32) / np.sqrt(fan_in)

    return {
        "w1": w(ks[0], (3, 3, 3, 16), 3 * 9),    "b1": w(ks[1], (16,), 16),
        "w2": w(ks[2], (3, 3, 16, 32), 16 * 9),  "b2": w(ks[3], (32,), 32),
        "w3": w(ks[4], (3, 3, 32, 64), 32 * 9),  "b3": w(ks[5], (64,), 64),
        "fc1_w": w(ks[6], (64 * 4 * 4, 128), 1024), "fc1_b": w(ks[7], (128,), 128),
        "fc2_w": w(ks[8], (128, num_classes), 128), "fc2_b": w(ks[9], (num_classes,), 10),
    }


if __name__ == "__main__":
    key = jax.random.PRNGKey(0)
    k_in, k_par = jax.random.split(key)
    x = jax.random.normal(k_in, (2, 3, 32, 32), jnp.float32)   # NCHW, like PyTorch
    params = init_params(k_par, num_classes=10)

    out = lightweight_cnn_forward(x, params)
    out = jax.block_until_ready(out)
    assert out.shape == (2, 10), out.shape

    ref = jax.block_until_ready(reference_forward(x, params))
    # Tolerance accounts for bf16 MXU inputs + bf16 inter-layer activations
    # (f32 accumulation everywhere); observed logit drift is O(1e-3).
    np.testing.assert_allclose(np.asarray(out), np.asarray(ref),
                               rtol=3e-2, atol=3e-2)
    print("KERNEL_OK")
</pallas_src>

<mosaic_0001>
module attributes {stable_mosaic.version = 11 : i64} {
  func.func @_conv_pool_kernel(%arg0: i32, %arg1: memref<4x32x216xbf16, #tpu.memory_space<vmem>>, %arg2: memref<216x128xbf16, #tpu.memory_space<vmem>>, %arg3: memref<1x128xf32, #tpu.memory_space<vmem>>, %arg4: memref<32x128xbf16, #tpu.memory_space<vmem>>) attributes {dimension_semantics = [#tpu.dimension_semantics<parallel>], iteration_bounds = array<i64: 2>, scalar_prefetch = 0 : i64, scratch_operands = 0 : i64, tpu.core_type = #tpu.core_type<tc>, window_params = [{transform_indices = @transform_0, window_bounds = array<i64: 4, 32, 216>}, {pipeline_mode = #tpu.pipeline_mode<synchronous>, transform_indices = @transform_1, window_bounds = array<i64: 216, 128>}, {pipeline_mode = #tpu.pipeline_mode<synchronous>, transform_indices = @transform_2, window_bounds = array<i64: 1, 128>}, {transform_indices = @transform_3, window_bounds = array<i64: 32, 128>}]} {
    %c0 = arith.constant 0 : index
    %c0_0 = arith.constant 0 : index
    %c0_1 = arith.constant 0 : index
    %0 = vector.load %arg1[%c0, %c0_0, %c0_1] : memref<4x32x216xbf16, #tpu.memory_space<vmem>>, vector<4x32x216xbf16>
    %1 = vector.shape_cast %0 : vector<4x32x216xbf16> to vector<128x216xbf16>
    %c0_2 = arith.constant 0 : index
    %c0_3 = arith.constant 0 : index
    %2 = vector.load %arg2[%c0_2, %c0_3] : memref<216x128xbf16, #tpu.memory_space<vmem>>, vector<216x128xbf16>
    %cst = arith.constant dense<0.000000e+00> : vector<128x128xf32>
    %3 = tpu.matmul %1, %2, %cst {dimension_numbers = #tpu.dot_dimension_numbers<[1], [0], [0], [1], [0, 0, 1, 1], [], []>} : vector<128x216xbf16>, vector<216x128xbf16>, vector<128x128xf32> -> vector<128x128xf32>
    %c0_4 = arith.constant 0 : index
    %c0_5 = arith.constant 0 : index
    %4 = vector.load %arg3[%c0_4, %c0_5] : memref<1x128xf32, #tpu.memory_space<vmem>>, vector<1x128xf32>
    %5 = vector.extract_strided_slice %3 {offsets = [0, 0], sizes = [32, 128], strides = [1, 1]} : vector<128x128xf32> to vector<32x128xf32>
    %6 = vector.extract_strided_slice %3 {offsets = [32, 0], sizes = [32, 128], strides = [1, 1]} : vector<128x128xf32> to vector<32x128xf32>
    %7 = vector.extract_strided_slice %3 {offsets = [64, 0], sizes = [32, 128], strides = [1, 1]} : vector<128x128xf32> to vector<32x128xf32>
    %8 = vector.extract_strided_slice %3 {offsets = [96, 0], sizes = [32, 128], strides = [1, 1]} : vector<128x128xf32> to vector<32x128xf32>
    %9 = arith.maximumf %5, %6 : vector<32x128xf32>
    %10 = arith.maximumf %7, %8 : vector<32x128xf32>
    %11 = arith.maximumf %9, %10 : vector<32x128xf32>
    %12 = vector.broadcast %4 : vector<1x128xf32> to vector<32x128xf32>
    %13 = arith.addf %11, %12 : vector<32x128xf32>
    %cst_6 = arith.constant 0.000000e+00 : f32
    %14 = vector.broadcast %cst_6 : f32 to vector<32x128xf32>
    %15 = arith.maximumf %13, %14 : vector<32x128xf32>
    %16 = arith.truncf %15 : vector<32x128xf32> to vector<32x128xbf16>
    %c0_7 = arith.constant 0 : index
    %c0_8 = arith.constant 0 : index
    %17 = vector.load %arg4[%c0_7, %c0_8] : memref<32x128xbf16, #tpu.memory_space<vmem>>, vector<32x128xbf16>
    tpu.vector_store %arg4[%c0_7, %c0_8], %16 {strides = array<i32>} : memref<32x128xbf16, #tpu.memory_space<vmem>>, vector<32x128xbf16>,
    return
  }
  func.func @transform_0(%arg0: i32) -> (i32, i32, i32) {
    %c0_i32 = arith.constant 0 : i32
    %c0_i32_0 = arith.constant 0 : i32
    %c0_i32_1 = arith.constant 0 : i32
    return %c0_i32, %arg0, %c0_i32_0 : i32, i32, i32
  }
  func.func @transform_1(%arg0: i32) -> (i32, i32) {
    %c0_i32 = arith.constant 0 : i32
    %c0_i32_0 = arith.constant 0 : i32
    %c0_i32_1 = arith.constant 0 : i32
    return %c0_i32, %c0_i32_0 : i32, i32
  }
  func.func @transform_2(%arg0: i32) -> (i32, i32) {
    %c0_i32 = arith.constant 0 : i32
    %c0_i32_0 = arith.constant 0 : i32
    %c0_i32_1 = arith.constant 0 : i32
    return %c0_i32, %c0_i32_0 : i32, i32
  }
  func.func @transform_3(%arg0: i32) -> (i32, i32) {
    %c0_i32 = arith.constant 0 : i32
    %c0_i32_0 = arith.constant 0 : i32
    return %arg0, %c0_i32 : i32, i32
  }
}

module attributes {stable_mosaic.version = 11 : i64} {
  func.func @_conv_pool_kernel(%arg0: i32, %arg1: memref<4x16x576xbf16, #tpu.memory_space<vmem>>, %arg2: memref<576x128xbf16, #tpu.memory_space<vmem>>, %arg3: memref<1x128xf32, #tpu.memory_space<vmem>>, %arg4: memref<16x128xbf16, #tpu.memory_space<vmem>>) attributes {dimension_semantics = [#tpu.dimension_semantics<parallel>], iteration_bounds = array<i64: 2>, scalar_prefetch = 0 : i64, scratch_operands = 0 : i64, tpu.core_type = #tpu.core_type<tc>, window_params = [{transform_indices = @transform_0, window_bounds = array<i64: 4, 16, 576>}, {pipeline_mode = #tpu.pipeline_mode<synchronous>, transform_indices = @transform_1, window_bounds = array<i64: 576, 128>}, {pipeline_mode = #tpu.pipeline_mode<synchronous>, transform_indices = @transform_2, window_bounds = array<i64: 1, 128>}, {transform_indices = @transform_3, window_bounds = array<i64: 16, 128>}]} {
    %c0 = arith.constant 0 : index
    %c0_0 = arith.constant 0 : index
    %c0_1 = arith.constant 0 : index
    %0 = vector.load %arg1[%c0, %c0_0, %c0_1] : memref<4x16x576xbf16, #tpu.memory_space<vmem>>, vector<4x16x576xbf16>
    %1 = vector.shape_cast %0 : vector<4x16x576xbf16> to vector<64x576xbf16>
    %c0_2 = arith.constant 0 : index
    %c0_3 = arith.constant 0 : index
    %2 = vector.load %arg2[%c0_2, %c0_3] : memref<576x128xbf16, #tpu.memory_space<vmem>>, vector<576x128xbf16>
    %cst = arith.constant dense<0.000000e+00> : vector<64x128xf32>
    %3 = tpu.matmul %1, %2, %cst {dimension_numbers = #tpu.dot_dimension_numbers<[1], [0], [0], [1], [0, 0, 1, 1], [], []>} : vector<64x576xbf16>, vector<576x128xbf16>, vector<64x128xf32> -> vector<64x128xf32>
    %c0_4 = arith.constant 0 : index
    %c0_5 = arith.constant 0 : index
    %4 = vector.load %arg3[%c0_4, %c0_5] : memref<1x128xf32, #tpu.memory_space<vmem>>, vector<1x128xf32>
    %5 = vector.extract_strided_slice %3 {offsets = [0, 0], sizes = [16, 128], strides = [1, 1]} : vector<64x128xf32> to vector<16x128xf32>
    %6 = vector.extract_strided_slice %3 {offsets = [16, 0], sizes = [16, 128], strides = [1, 1]} : vector<64x128xf32> to vector<16x128xf32>
    %7 = vector.extract_strided_slice %3 {offsets = [32, 0], sizes = [16, 128], strides = [1, 1]} : vector<64x128xf32> to vector<16x128xf32>
    %8 = vector.extract_strided_slice %3 {offsets = [48, 0], sizes = [16, 128], strides = [1, 1]} : vector<64x128xf32> to vector<16x128xf32>
    %9 = arith.maximumf %5, %6 : vector<16x128xf32>
    %10 = arith.maximumf %7, %8 : vector<16x128xf32>
    %11 = arith.maximumf %9, %10 : vector<16x128xf32>
    %12 = vector.broadcast %4 : vector<1x128xf32> to vector<16x128xf32>
    %13 = arith.addf %11, %12 : vector<16x128xf32>
    %cst_6 = arith.constant 0.000000e+00 : f32
    %14 = vector.broadcast %cst_6 : f32 to vector<16x128xf32>
    %15 = arith.maximumf %13, %14 : vector<16x128xf32>
    %16 = arith.truncf %15 : vector<16x128xf32> to vector<16x128xbf16>
    %c0_7 = arith.constant 0 : index
    %c0_8 = arith.constant 0 : index
    %17 = vector.load %arg4[%c0_7, %c0_8] : memref<16x128xbf16, #tpu.memory_space<vmem>>, vector<16x128xbf16>
    tpu.vector_store %arg4[%c0_7, %c0_8], %16 {strides = array<i32>} : memref<16x128xbf16, #tpu.memory_space<vmem>>, vector<16x128xbf16>,
    return
  }
  func.func @transform_0(%arg0: i32) -> (i32, i32, i32) {
    %c0_i32 = arith.constant 0 : i32
    %c0_i32_0 = arith.constant 0 : i32
    %c0_i32_1 = arith.constant 0 : i32
    return %c0_i32, %arg0, %c0_i32_0 : i32, i32, i32
  }
  func.func @transform_1(%arg0: i32) -> (i32, i32) {
    %c0_i32 = arith.constant 0 : i32
    %c0_i32_0 = arith.constant 0 : i32
    %c0_i32_1 = arith.constant 0 : i32
    return %c0_i32, %c0_i32_0 : i32, i32
  }
  func.func @transform_2(%arg0: i32) -> (i32, i32) {
    %c0_i32 = arith.constant 0 : i32
    %c0_i32_0 = arith.constant 0 : i32
    %c0_i32_1 = arith.constant 0 : i32
    return %c0_i32, %c0_i32_0 : i32, i32
  }
  func.func @transform_3(%arg0: i32) -> (i32, i32) {
    %c0_i32 = arith.constant 0 : i32
    %c0_i32_0 = arith.constant 0 : i32
    return %arg0, %c0_i32 : i32, i32
  }
}

module attributes {stable_mosaic.version = 11 : i64} {
  func.func @_conv_pool_kernel(%arg0: i32, %arg1: memref<4x8x576xbf16, #tpu.memory_space<vmem>>, %arg2: memref<576x128xbf16, #tpu.memory_space<vmem>>, %arg3: memref<1x128xf32, #tpu.memory_space<vmem>>, %arg4: memref<8x128xbf16, #tpu.memory_space<vmem>>) attributes {dimension_semantics = [#tpu.dimension_semantics<parallel>], iteration_bounds = array<i64: 2>, scalar_prefetch = 0 : i64, scratch_operands = 0 : i64, tpu.core_type = #tpu.core_type<tc>, window_params = [{transform_indices = @transform_0, window_bounds = array<i64: 4, 8, 576>}, {pipeline_mode = #tpu.pipeline_mode<synchronous>, transform_indices = @transform_1, window_bounds = array<i64: 576, 128>}, {pipeline_mode = #tpu.pipeline_mode<synchronous>, transform_indices = @transform_2, window_bounds = array<i64: 1, 128>}, {transform_indices = @transform_3, window_bounds = array<i64: 8, 128>}]} {
    %c0 = arith.constant 0 : index
    %c0_0 = arith.constant 0 : index
    %c0_1 = arith.constant 0 : index
    %0 = vector.load %arg1[%c0, %c0_0, %c0_1] : memref<4x8x576xbf16, #tpu.memory_space<vmem>>, vector<4x8x576xbf16>
    %1 = vector.shape_cast %0 : vector<4x8x576xbf16> to vector<32x576xbf16>
    %c0_2 = arith.constant 0 : index
    %c0_3 = arith.constant 0 : index
    %2 = vector.load %arg2[%c0_2, %c0_3] : memref<576x128xbf16, #tpu.memory_space<vmem>>, vector<576x128xbf16>
    %cst = arith.constant dense<0.000000e+00> : vector<32x128xf32>
    %3 = tpu.matmul %1, %2, %cst {dimension_numbers = #tpu.dot_dimension_numbers<[1], [0], [0], [1], [0, 0, 1, 1], [], []>} : vector<32x576xbf16>, vector<576x128xbf16>, vector<32x128xf32> -> vector<32x128xf32>
    %c0_4 = arith.constant 0 : index
    %c0_5 = arith.constant 0 : index
    %4 = vector.load %arg3[%c0_4, %c0_5] : memref<1x128xf32, #tpu.memory_space<vmem>>, vector<1x128xf32>
    %5 = vector.extract_strided_slice %3 {offsets = [0, 0], sizes = [8, 128], strides = [1, 1]} : vector<32x128xf32> to vector<8x128xf32>
    %6 = vector.extract_strided_slice %3 {offsets = [8, 0], sizes = [8, 128], strides = [1, 1]} : vector<32x128xf32> to vector<8x128xf32>
    %7 = vector.extract_strided_slice %3 {offsets = [16, 0], sizes = [8, 128], strides = [1, 1]} : vector<32x128xf32> to vector<8x128xf32>
    %8 = vector.extract_strided_slice %3 {offsets = [24, 0], sizes = [8, 128], strides = [1, 1]} : vector<32x128xf32> to vector<8x128xf32>
    %9 = vector.broadcast %4 : vector<1x128xf32> to vector<8x128xf32>
    %10 = arith.addf %5, %9 : vector<8x128xf32>
    %cst_6 = arith.constant 0.000000e+00 : f32
    %11 = vector.broadcast %cst_6 : f32 to vector<8x128xf32>
    %12 = arith.maximumf %10, %11 : vector<8x128xf32>
    %13 = vector.broadcast %4 : vector<1x128xf32> to vector<8x128xf32>
    %14 = arith.addf %6, %13 : vector<8x128xf32>
    %cst_7 = arith.constant 0.000000e+00 : f32
    %15 = vector.broadcast %cst_7 : f32 to vector<8x128xf32>
    %16 = arith.maximumf %14, %15 : vector<8x128xf32>
    %17 = vector.broadcast %4 : vector<1x128xf32> to vector<8x128xf32>
    %18 = arith.addf %7, %17 : vector<8x128xf32>
    %cst_8 = arith.constant 0.000000e+00 : f32
    %19 = vector.broadcast %cst_8 : f32 to vector<8x128xf32>
    %20 = arith.maximumf %18, %19 : vector<8x128xf32>
    %21 = vector.broadcast %4 : vector<1x128xf32> to vector<8x128xf32>
    %22 = arith.addf %8, %21 : vector<8x128xf32>
    %cst_9 = arith.constant 0.000000e+00 : f32
    %23 = vector.broadcast %cst_9 : f32 to vector<8x128xf32>
    %24 = arith.maximumf %22, %23 : vector<8x128xf32>
    %25 = arith.addf %12, %16 : vector<8x128xf32>
    %26 = arith.addf %20, %24 : vector<8x128xf32>
    %27 = arith.addf %25, %26 : vector<8x128xf32>
    %cst_10 = arith.constant 2.500000e-01 : f32
    %28 = vector.broadcast %cst_10 : f32 to vector<8x128xf32>
    %29 = arith.mulf %27, %28 : vector<8x128xf32>
    %30 = arith.truncf %29 : vector<8x128xf32> to vector<8x128xbf16>
    %c0_11 = arith.constant 0 : index
    %c0_12 = arith.constant 0 : index
    %31 = vector.load %arg4[%c0_11, %c0_12] : memref<8x128xbf16, #tpu.memory_space<vmem>>, vector<8x128xbf16>
    tpu.vector_store %arg4[%c0_11, %c0_12], %30 {strides = array<i32>} : memref<8x128xbf16, #tpu.memory_space<vmem>>, vector<8x128xbf16>,
    return
  }
  func.func @transform_0(%arg0: i32) -> (i32, i32, i32) {
    %c0_i32 = arith.constant 0 : i32
    %c0_i32_0 = arith.constant 0 : i32
    %c0_i32_1 = arith.constant 0 : i32
    return %c0_i32, %arg0, %c0_i32_0 : i32, i32, i32
  }
  func.func @transform_1(%arg0: i32) -> (i32, i32) {
    %c0_i32 = arith.constant 0 : i32
    %c0_i32_0 = arith.constant 0 : i32
    %c0_i32_1 = arith.constant 0 : i32
    return %c0_i32, %c0_i32_0 : i32, i32
  }
  func.func @transform_2(%arg0: i32) -> (i32, i32) {
    %c0_i32 = arith.constant 0 : i32
    %c0_i32_0 = arith.constant 0 : i32
    %c0_i32_1 = arith.constant 0 : i32
    return %c0_i32, %c0_i32_0 : i32, i32
  }
  func.func @transform_3(%arg0: i32) -> (i32, i32) {
    %c0_i32 = arith.constant 0 : i32
    %c0_i32_0 = arith.constant 0 : i32
    return %arg0, %c0_i32 : i32, i32
  }
}

module attributes {stable_mosaic.version = 11 : i64} {
  func.func @_classifier_kernel(%arg0: i32, %arg1: memref<2x1024xbf16, #tpu.memory_space<vmem>>, %arg2: memref<1024x128xbf16, #tpu.memory_space<vmem>>, %arg3: memref<1x128xf32, #tpu.memory_space<vmem>>, %arg4: memref<128x10xf32, #tpu.memory_space<vmem>>, %arg5: memref<1x10xf32, #tpu.memory_space<vmem>>, %arg6: memref<2x10xf32, #tpu.memory_space<vmem>>) attributes {dimension_semantics = [#tpu.dimension_semantics<parallel>], iteration_bounds = array<i64: 1>, scalar_prefetch = 0 : i64, scratch_operands = 0 : i64, tpu.core_type = #tpu.core_type<tc>, window_params = [{transform_indices = @transform_0, window_bounds = array<i64: 2, 1024>}, {pipeline_mode = #tpu.pipeline_mode<synchronous>, transform_indices = @transform_1, window_bounds = array<i64: 1024, 128>}, {pipeline_mode = #tpu.pipeline_mode<synchronous>, transform_indices = @transform_2, window_bounds = array<i64: 1, 128>}, {pipeline_mode = #tpu.pipeline_mode<synchronous>, transform_indices = @transform_3, window_bounds = array<i64: 128, 10>}, {pipeline_mode = #tpu.pipeline_mode<synchronous>, transform_indices = @transform_4, window_bounds = array<i64: 1, 10>}, {transform_indices = @transform_5, window_bounds = array<i64: 2, 10>}]} {
    %c0 = arith.constant 0 : index
    %c0_0 = arith.constant 0 : index
    %0 = vector.load %arg1[%c0, %c0_0] : memref<2x1024xbf16, #tpu.memory_space<vmem>>, vector<2x1024xbf16>
    %c0_1 = arith.constant 0 : index
    %c0_2 = arith.constant 0 : index
    %1 = vector.load %arg2[%c0_1, %c0_2] : memref<1024x128xbf16, #tpu.memory_space<vmem>>, vector<1024x128xbf16>
    %cst = arith.constant dense<0.000000e+00> : vector<2x128xf32>
    %2 = tpu.matmul %0, %1, %cst {dimension_numbers = #tpu.dot_dimension_numbers<[1], [0], [0], [1], [0, 0, 1, 1], [], []>} : vector<2x1024xbf16>, vector<1024x128xbf16>, vector<2x128xf32> -> vector<2x128xf32>
    %c0_3 = arith.constant 0 : index
    %c0_4 = arith.constant 0 : index
    %3 = vector.load %arg3[%c0_3, %c0_4] : memref<1x128xf32, #tpu.memory_space<vmem>>, vector<1x128xf32>
    %4 = vector.broadcast %3 : vector<1x128xf32> to vector<2x128xf32>
    %5 = arith.addf %2, %4 : vector<2x128xf32>
    %cst_5 = arith.constant 0.000000e+00 : f32
    %6 = vector.broadcast %cst_5 : f32 to vector<2x128xf32>
    %7 = arith.maximumf %5, %6 : vector<2x128xf32>
    %c0_6 = arith.constant 0 : index
    %c0_7 = arith.constant 0 : index
    %8 = vector.load %arg4[%c0_6, %c0_7] : memref<128x10xf32, #tpu.memory_space<vmem>>, vector<128x10xf32>
    %cst_8 = arith.constant dense<0.000000e+00> : vector<2x10xf32>
    %9 = tpu.matmul %7, %8, %cst_8 {dimension_numbers = #tpu.dot_dimension_numbers<[1], [0], [0], [1], [0, 0, 1, 1], [], []>} : vector<2x128xf32>, vector<128x10xf32>, vector<2x10xf32> -> vector<2x10xf32>
    %c0_9 = arith.constant 0 : index
    %c0_10 = arith.constant 0 : index
    %10 = vector.load %arg5[%c0_9, %c0_10] : memref<1x10xf32, #tpu.memory_space<vmem>>, vector<1x10xf32>
    %11 = vector.broadcast %10 : vector<1x10xf32> to vector<2x10xf32>
    %12 = arith.addf %9, %11 : vector<2x10xf32>
    %c0_11 = arith.constant 0 : index
    %c0_12 = arith.constant 0 : index
    %13 = vector.load %arg6[%c0_11, %c0_12] : memref<2x10xf32, #tpu.memory_space<vmem>>, vector<2x10xf32>
    tpu.vector_store %arg6[%c0_11, %c0_12], %12 {strides = array<i32>} : memref<2x10xf32, #tpu.memory_space<vmem>>, vector<2x10xf32>,
    return
  }
  func.func @transform_0(%arg0: i32) -> (i32, i32) {
    %c0_i32 = arith.constant 0 : i32
    %c0_i32_0 = arith.constant 0 : i32
    return %arg0, %c0_i32 : i32, i32
  }
  func.func @transform_1(%arg0: i32) -> (i32, i32) {
    %c0_i32 = arith.constant 0 : i32
    %c0_i32_0 = arith.constant 0 : i32
    %c0_i32_1 = arith.constant 0 : i32
    return %c0_i32, %c0_i32_0 : i32, i32
  }
  func.func @transform_2(%arg0: i32) -> (i32, i32) {
    %c0_i32 = arith.constant 0 : i32
    %c0_i32_0 = arith.constant 0 : i32
    %c0_i32_1 = arith.constant 0 : i32
    return %c0_i32, %c0_i32_0 : i32, i32
  }
  func.func @transform_3(%arg0: i32) -> (i32, i32) {
    %c0_i32 = arith.constant 0 : i32
    %c0_i32_0 = arith.constant 0 : i32
    %c0_i32_1 = arith.constant 0 : i32
    return %c0_i32, %c0_i32_0 : i32, i32
  }
  func.func @transform_4(%arg0: i32) -> (i32, i32) {
    %c0_i32 = arith.constant 0 : i32
    %c0_i32_0 = arith.constant 0 : i32
    %c0_i32_1 = arith.constant 0 : i32
    return %c0_i32, %c0_i32_0 : i32, i32
  }
  func.func @transform_5(%arg0: i32) -> (i32, i32) {
    %c0_i32 = arith.constant 0 : i32
    %c0_i32_0 = arith.constant 0 : i32
    return %arg0, %c0_i32 : i32, i32
  }
}

</mosaic_0001>

<bundles_post_ra>
// kernel: mul.4
= control target key start
LH: loop header
LB: loop body
LE: loop exit
PB: predicated region body
PF: predicated region fallthrough
CT: control target
= control target key end

     0   :  { %vm46_vm0 = vcmask 130048   ;;  %s184_s0 = inlined_call_operand.vmem [shape: f32[3,3,3,16], index: 0, kind: input, shape index: {}]   ;;  %s185_s1 = inlined_call_operand.vmem [shape: f32[27,16], index: 1, kind: output, shape index: {}]  }
   0x1   :  { %v95_v0 = vld [vmem:[%s184_s0 + $0x20] sm:$0xf]  ;;  %v96_v1 = vld [vmem:[%s184_s0 + $0x1c] sm:$0xf]  ;;  %v97_v2 = vld [vmem:[%s184_s0 + $0x18] sm:$0xf] }
   0x2   :  { %8 = vst [vmem:[#allocation0 + $0x40] sm:$0xf] %v95_v0  ;;  %13 = vst [vmem:[#allocation0 + $0x38] sm:$0xf] %v96_v1  ;;  %v98_v3 = vld [vmem:[%s184_s0 + $0x14] sm:$0xf] }
   0x3   :  { %18 = vst [vmem:[#allocation0 + $0x30] sm:$0xf] %v97_v2  ;;  %v99_v4 = vld [vmem:[%s184_s0 + $0x10] sm:$0xf]  ;;  %v100_v5 = vld [vmem:[%s184_s0 + $0xc] sm:$0xf] }
   0x4   :  { %23 = vst [vmem:[#allocation0 + $0x28] sm:$0xf] %v98_v3  ;;  %28 = vst [vmem:[#allocation0 + $0x20] sm:$0xf] %v99_v4  ;;  %v101_v6 = vld [vmem:[%s184_s0 + $0x8] sm:$0xf] }
   0x5   :  { %33 = vst [vmem:[#allocation0 + $0x18] sm:$0xf] %v100_v5  ;;  %v102_v7 = vld [vmem:[%s184_s0 + $0x4] sm:$0xf]  ;;  %v43_v8 = vld [vmem:[%s184_s0] sm:$0xf] }
   0x6   :  { %38 = vst [vmem:[#allocation0 + $0x10] sm:$0xf] %v101_v6  ;;  %42 = vst [vmem:[#allocation0 + $0x8] sm:$0xf] %v102_v7 }
   0x7   :  { %44 = vst [vmem:[#allocation0] sm:$0xf] %v43_v8 }
   0x9   :  { %v79_v10 = vld [vmem:[#allocation0 + $0x38] sm:$0x7]   ;;  %v84_v11 = vld [vmem:[#allocation0 + $0x40] sm:$0x7]  }
   0xa   :  { %v74_v9 = vld [vmem:[#allocation0 + $0x30] sm:$0x7]   ;;  %109 = vst.msk [vmem:[%s185_s1 + $0x15] sm:$0x7] %vm46_vm0, %v79_v10   ;;  %110 = vst.msk [vmem:[%s185_s1 + $0x18] sm:$0x7] %vm46_vm0, %v84_v11  }
   0xb   :  { %v64_v13 = vld [vmem:[#allocation0 + $0x20] sm:$0x7]   ;;  %v69_v14 = vld [vmem:[#allocation0 + $0x28] sm:$0x7]   ;;  %108 = vst.msk [vmem:[%s185_s1 + $0x12] sm:$0x7] %vm46_vm0, %v74_v9  }
   0xc   :  { %v59_v12 = vld [vmem:[#allocation0 + $0x18] sm:$0x7]   ;;  %106 = vst.msk [vmem:[%s185_s1 + $0xc] sm:$0x7] %vm46_vm0, %v64_v13   ;;  %107 = vst.msk [vmem:[%s185_s1 + $0xf] sm:$0x7] %vm46_vm0, %v69_v14  }
   0xd   :  { %v49_v16 = vld [vmem:[#allocation0 + $0x8] sm:$0x7]   ;;  %v54_v17 = vld [vmem:[#allocation0 + $0x10] sm:$0x7]   ;;  %105 = vst.msk [vmem:[%s185_s1 + $0x9] sm:$0x7] %vm46_vm0, %v59_v12  }
   0xe   :  { %v45_v15 = vld [vmem:[#allocation0] sm:$0x7]   ;;  %103 = vst.msk [vmem:[%s185_s1 + $0x3] sm:$0x7] %vm46_vm0, %v49_v16   ;;  %104 = vst.msk [vmem:[%s185_s1 + $0x6] sm:$0x7] %vm46_vm0, %v54_v17  }
   0xf   :  { %47 = vst.msk [vmem:[%s185_s1] sm:$0x7] %vm46_vm0, %v45_v15  }

// kernel: tile.18
= control target key start
LH: loop header
LB: loop body
LE: loop exit
PB: predicated region body
PF: predicated region fallthrough
CT: control target
= control target key end

     0   :  { %s22_s0 = inlined_call_operand.vmem [shape: f32[16], index: 0, kind: input, shape index: {}]   ;;  %s23_s1 = inlined_call_operand.vmem [shape: f32[8,16], index: 1, kind: output, shape index: {}]  }
   0x1   :  { %v4_v0 = vld [vmem:[%s22_s0] ss:$0 sm:$0xff] }
   0x2   :  { %5 = vst [vmem:[%s23_s1] sm:$0xff] %v4_v0 }

// kernel: tile.19
= control target key start
LH: loop header
LB: loop body
LE: loop exit
PB: predicated region body
PF: predicated region fallthrough
CT: control target
= control target key end

     0   :  { %s67_s10 = smov 112   ;;  %s68_s11 = smov 80   ;;  %vm3_vm0 = vcmask 130048   ;;  %vm9_vm1 = vcmask 1048448   ;;  %vm15_vm2 = vcmask 917248   ;;  %vm21_vm3 = vcmask 786048   ;;  %s111_s0 = inlined_call_operand.vmem [shape: f32[8,16], index: 0, kind: input, shape index: {}]   ;;  %s112_s1 = inlined_call_operand.vmem [shape: f32[1,128], index: 1, kind: output, shape index: {}]  }
   0x1   :  { %v53_v0 = vld [vmem:[%s111_s0 + $0x7] sm:$0x1]   ;;  %v55_v1 = vld [vmem:[%s111_s0 + $0x5] sm:$0x1]   ;;  %v54_v2 = vld [vmem:[%s111_s0 + $0x6] sm:$0x1]  }
   0x2   :  { %7 = vrot.lane.b32.xlu0 %v53_v0, %s67_s10  ;;  %19 = vrot.lane.b32.xlu1 %v55_v1, %s68_s11  ;;  %v56_v3 = vld [vmem:[%s111_s0 + $0x4] sm:$0x1]   ;;  %v2_v4 = vld [vmem:[%s111_s0] sm:$0x1]   ;;  %s69_s18 = smov 96   ;;  %s70_s19 = smov 64  }
   0x3   :  { %4 = vst.msk [vmem:[#allocation0] sm:$0x1] %vm3_vm0, %v2_v4   ;;  %v57_v5 = vld [vmem:[%s111_s0 + $0x3] sm:$0x1]   ;;  %v58_v6 = vld [vmem:[%s111_s0 + $0x2] sm:$0x1]  }
   0x4   :  { %s71_s24 = smov 48   ;;  %s72_s25 = smov 32   ;;  %v59_v7 = vld [vmem:[%s111_s0 + $0x1] sm:$0x1]   ;;  %vm27_vm4 = vcmask 654848   ;;  %vm33_vm5 = vcmask 523648  }
   0x5   :  { %s73_s0 = smov 16   ;;  %vm39_vm6 = vcmask 392448   ;;  %vm45_vm7 = vcmask 261248  }
   0x6   :  { %13 = vrot.lane.b32.xlu0 %v54_v2, %s69_s18  ;;  %25 = vrot.lane.b32.xlu1 %v56_v3, %s70_s19 }
   0xa   :  { %31 = vrot.lane.b32.xlu0 %v57_v5, %s71_s24  ;;  %37 = vrot.lane.b32.xlu1 %v58_v6, %s72_s25 }
   0xe   :  { %43 = vrot.lane.b32.xlu0 %v59_v7, %s73_s0 }
  0x74   :  { %v8_v8 = vpop.permute.xlu0 %7   ;;  %v20_v9 = vpop.permute.xlu1 %19  }
  0x75   :  { %10 = vst.msk [vmem:[#allocation0] sm:$0x1] %vm9_vm1, %v8_v8  }
  0x78   :  { %v14_v10 = vpop.permute.xlu0 %13   ;;  %v26_v11 = vpop.permute.xlu1 %25  }
  0x79   :  { %16 = vst.msk [vmem:[#allocation0] sm:$0x1] %vm15_vm2, %v14_v10  }
  0x7a   :  { %22 = vst.msk [vmem:[#allocation0] sm:$0x1] %vm21_vm3, %v20_v9  }
  0x7b   :  { %28 = vst.msk [vmem:[#allocation0] sm:$0x1] %vm27_vm4, %v26_v11  }
  0x7c   :  { %v32_v12 = vpop.permute.xlu0 %31   ;;  %v38_v13 = vpop.permute.xlu1 %37  }
  0x7d   :  { %34 = vst.msk [vmem:[#allocation0] sm:$0x1] %vm33_vm5, %v32_v12  }
  0x7e   :  { %40 = vst.msk [vmem:[#allocation0] sm:$0x1] %vm39_vm6, %v38_v13  }
  0x80   :  { %v44_v14 = vpop.permute.xlu0 %43  }
  0x81   :  { %46 = vst.msk [vmem:[#allocation0] sm:$0x1] %vm45_vm7, %v44_v14  }
  0x88   :  { %v50_v15 = vld [vmem:[#allocation0] sm:$0x1] }
  0x89   :  { %52 = vst [vmem:[%s112_s1] sm:$0x1] %v50_v15 }

// kernel: lightweight_cnn_forward.4
= control target key start
LH: loop header
LB: loop body
LE: loop exit
PB: predicated region body
PF: predicated region fallthrough
CT: control target
= control target key end

     0   :  { %s911_s12 = smov 0   ;;  %s913_s13 = smov 0   ;;  %s1080_s0 = inlined_call_operand.vmem [shape: bf16[4,64,216], index: 0, kind: input, shape index: {}]   ;;  %s1081_s1 = inlined_call_operand.vmem [shape: bf16[216,128], index: 1, kind: input, shape index: {}]   ;;  %s1082_s2 = inlined_call_operand.vmem [shape: f32[1,128], index: 2, kind: input, shape index: {}]   ;;  %s1083_s3 = inlined_call_operand.vmem [shape: bf16[64,128], index: 3, kind: output, shape index: {}]  }
   0x1   :  { %s915_s14 = smov 0  }
   0x2 LB: > { %s701_s15 = sadd.s32 4294967295, %s888_s14   ;;  %s928_s16 = sadd.s32 1, %s888_s14   ;;  %s888_s14 = sphi %s915_s14, %s1086_s14   ;;  %s884_s13 = sphi %s913_s13, %s1085_s13   ;;  %s880_s12 = sphi %s911_s12, %s1084_s12  }
   0x3   : > { %s17_s17 = ssub.s32 %s888_s14, %s928_s16  ;;  %s20_s18 = sadd.s32 1, %s884_s13 }
   0x4   : > { %p18_p0 = scmp.eq.s32.totalorder %s17_s17, 0  ;;  %p27_p1 = scmp.ne.s32.totalorder %s884_s13, %s880_s12 }
   0x5   : > { %p28_p2 = scmp.eq.s32.totalorder %s888_s14, 0  ;;  %p704_p4 = scmp.ge.s32.totalorder %s888_s14, 2 }
   0x6   : > { %s937_s19 = scalar_select %p18_p0, %s884_s13, %s20_s18  }
   0x7   : > { %p29_p3 = por %p28_p2, %p27_p1  ;;  %127 = sbr.rel (%p704_p4) target bundleno = 26 (0x1a), region = 24 }
   0xe   : > { %130 = sbr.rel (!%p29_p3) target bundleno = 26 (0x1a), region = 28  ;;  %s132_s20 = sand.u32 (%p29_p3), 1, %s884_s13  }
   0xf   : > { %s759_s21 = sshll.u32 (%p29_p3), %s888_s14, 5  ;;  %s705_s22 = sshll.u32 (%p29_p3), %s132_s20, 7 }
  0x10   : > { %s945_s25 = scalar_lea.vmem (%p29_p3), %s1080_s0, %s759_s21  ;;  %s134_s26 = scalar_lea.vmem (%p29_p3), [#allocation2], %s705_s22 }
  0x11   : > { %v196_v0 = vld [vmem:[%s945_s25] sm:$0xff] (%p29_p3)  ;;  %v198_v1 = vld [vmem:[%s945_s25 + $0x8] sm:$0xff] (%p29_p3)  ;;  %v200_v2 = vld [vmem:[%s945_s25 + $0x10] sm:$0xff] (%p29_p3) }
  0x12   : > { %197 = vst [vmem:[%s134_s26] sm:$0xff] (%p29_p3), %v196_v0  ;;  %199 = vst [vmem:[%s134_s26 + $0x8] sm:$0xff] (%p29_p3), %v198_v1  ;;  %v202_v3 = vld [vmem:[%s945_s25 + $0x18] sm:$0xff] (%p29_p3)  ;;  %v204_v4 = vld [vmem:[%s945_s25 + $0x40] sm:$0xff] (%p29_p3) }
  0x13   : > { %201 = vst [vmem:[%s134_s26 + $0x10] sm:$0xff] (%p29_p3), %v200_v2  ;;  %v206_v5 = vld [vmem:[%s945_s25 + $0x48] sm:$0xff] (%p29_p3)  ;;  %203 = vst [vmem:[%s134_s26 + $0x18] sm:$0xff] (%p29_p3), %v202_v3  ;;  %v208_v6 = vld [vmem:[%s945_s25 + $0x50] sm:$0xff] (%p29_p3) }
  0x14   : > { %205 = vst [vmem:[%s134_s26 + $0x20] sm:$0xff] (%p29_p3), %v204_v4  ;;  %207 = vst [vmem:[%s134_s26 + $0x28] sm:$0xff] (%p29_p3), %v206_v5  ;;  %v210_v7 = vld [vmem:[%s945_s25 + $0x58] sm:$0xff] (%p29_p3)  ;;  %v212_v8 = vld [vmem:[%s945_s25 + $0x80] sm:$0xff] (%p29_p3) }
  0x15   : > { %209 = vst [vmem:[%s134_s26 + $0x30] sm:$0xff] %v208_v6  ;;  %211 = vst [vmem:[%s134_s26 + $0x38] sm:$0xff] %v210_v7  ;;  %v214_v9 = vld [vmem:[%s945_s25 + $0x88] sm:$0xff]  ;;  %v216_v10 = vld [vmem:[%s945_s25 + $0x90] sm:$0xff] }
  0x16   : > { %213 = vst [vmem:[%s134_s26 + $0x40] sm:$0xff] %v212_v8  ;;  %v218_v11 = vld [vmem:[%s945_s25 + $0x98] sm:$0xff]  ;;  %215 = vst [vmem:[%s134_s26 + $0x48] sm:$0xff] %v214_v9  ;;  %v220_v12 = vld [vmem:[%s945_s25 + $0xc0] sm:$0xff] }
  0x17   : > { %217 = vst [vmem:[%s134_s26 + $0x50] sm:$0xff] %v216_v10  ;;  %219 = vst [vmem:[%s134_s26 + $0x58] sm:$0xff] %v218_v11  ;;  %v222_v13 = vld [vmem:[%s945_s25 + $0xc8] sm:$0xff]  ;;  %v224_v14 = vld [vmem:[%s945_s25 + $0xd0] sm:$0xff] }
  0x18   : > { %221 = vst [vmem:[%s134_s26 + $0x60] sm:$0xff] %v220_v12  ;;  %223 = vst [vmem:[%s134_s26 + $0x68] sm:$0xff] %v222_v13  ;;  %v226_v15 = vld [vmem:[%s945_s25 + $0xd8] sm:$0xff] }
  0x19   : > { %225 = vst [vmem:[%s134_s26 + $0x70] sm:$0xff] %v224_v14  ;;  %227 = vst [vmem:[%s134_s26 + $0x78] sm:$0xff] %v226_v15 }
  0x1a PF: > { %p709_p5 = scmp.ge.s32.totalorder %s888_s14, 1  ;;  %p232_p6 = scmp.lt.s32.totalorder %s888_s14, 3 }
  0x1c   : > { %p233_p7 = pnand %p709_p5, %p232_p6 }
  0x1d   : > { %v828_v16 = vld [vmem:[%s1081_s1] sm:$0xff] (!%p233_p7)   ;;  %v890_v17 = vmov (!%p233_p7), 0   ;;  %v829_v18 = vld [vmem:[%s1081_s1 + $0x8] sm:$0xff] (!%p233_p7)   ;;  %s239_s4 = sand.u32 (!%p233_p7), 1, %s880_s12   ;;  %v830_v19 = vld [vmem:[%s1081_s1 + $0x10] sm:$0xff] (!%p233_p7)   ;;  %vm466_vm0 = vcmask (!%p233_p7), 719872  }
  0x1e   : > { %236 = sbr.rel (%p233_p7) target bundleno = 335 (0x14f), region = 66  ;;  %495 = vmatprep.subr.bf16.mxu0 (!%p233_p7), %v890_v17  ;;  %775 = vmatprep.subr.bf16.mxu1 (!%p233_p7), %v890_v17  ;;  %s710_s7 = sshll.u32 (!%p233_p7), %s239_s4, 7  ;;  %v831_v20 = vld [vmem:[%s1081_s1 + $0x18] sm:$0xff] (!%p233_p7)   ;;  %v832_v21 = vld [vmem:[%s1081_s1 + $0x20] sm:$0xff] (!%p233_p7)   ;;  %v833_v24 = vld [vmem:[%s1081_s1 + $0x28] sm:$0xff] (!%p233_p7)   ;;  %vm491_vm1 = vcmask (!%p233_p7), 1043456  }
  0x1f   : > { %496 = vmatpush1.bf16.msra.mxu0 (!%p233_p7), %v828_v16  ;;  %789 = vmatpush1.bf16.msra.mxu1 (!%p233_p7), %v828_v16  ;;  %s986_s10 = scalar_lea.vmem (!%p233_p7), [#allocation2], %s710_s7  ;;  %v834_v25 = vld [vmem:[%s1081_s1 + $0x30] sm:$0xff] (!%p233_p7)   ;;  %v835_v26 = vld [vmem:[%s1081_s1 + $0x38] sm:$0xff] (!%p233_p7)   ;;  %v836_v27 = vld [vmem:[%s1081_s1 + $0x40] sm:$0xff] (!%p233_p7)   ;;  %s711_s9 = sshll.u32 (!%p233_p7), %s701_s15, 2 }
  0x20   : > { %497 = vmatprep.subr.bf16.mxu0 (!%p233_p7), %v890_v17  ;;  %776 = vmatprep.subr.bf16.mxu1 (!%p233_p7), %v890_v17  ;;  %v844_v22 = vld [vmem:[%s986_s10 + $0x4] ss:$8 sps:$4 sm:$0xff] (!%p233_p7)   ;;  %v838_v29 = vld [vmem:[%s1081_s1 + $0x50] sm:$0xff] (!%p233_p7)   ;;  %v839_v30 = vld [vmem:[%s1081_s1 + $0x58] sm:$0xff] (!%p233_p7)   ;;  %p264_p8 = scmp.lt.s32.totalorder (!%p233_p7), %s711_s9, 7 }
  0x21   : > { %743 = vmatprep.mubr.msk.bf16.mxu0 (!%p233_p7), %vm466_vm0, %v844_v22  ;;  %v847_v23 = vld [vmem:[%s986_s10 + $0x44] ss:$8 sps:$4 sm:$0xff] (!%p233_p7)   ;;  %v841_v32 = vld [vmem:[%s1081_s1 + $0x68] ss:$0 sps:$4 sm:$0xff] (!%p233_p7)   ;;  %v848_v36 = vld [vmem:[%s986_s10 + $0x14] ss:$8 sps:$4 sm:$0xff] (!%p233_p7)  }
  0x22   : > { %747 = vmatprep.mubr.msk.bf16.mxu1 (!%p233_p7), %vm466_vm0, %v847_v23  ;;  %v837_v28 = vld [vmem:[%s1081_s1 + $0x48] sm:$0xff] (!%p233_p7)   ;;  %v840_v31 = vld [vmem:[%s1081_s1 + $0x60] sm:$0xff] (!%p233_p7)   ;;  %v493_v33 = vsel (!%p233_p7), %vm491_vm1, %v841_v32, 0  ;;  %v850_v37 = vld [vmem:[%s986_s10 + $0x54] ss:$8 sps:$4 sm:$0xff] (!%p233_p7)  }
  0x23   : > { %498 = vmatpush1.bf16.msra.mxu0 (!%p233_p7), %v829_v18  ;;  %790 = vmatpush1.bf16.msra.mxu1 (!%p233_p7), %v829_v18  ;;  %v842_v34 = vld [vmem:[%s986_s10] ss:$8 sps:$4 sm:$0xff] (!%p233_p7)   ;;  %v852_v38 = vld [vmem:[%s986_s10 + $0x10] ss:$8 sps:$4 sm:$0xff] (!%p233_p7)   ;;  %v854_v40 = vld [vmem:[%s986_s10 + $0x24] ss:$8 sps:$4 sm:$0xff] (!%p233_p7)  }
  0x24   : > { %499 = vmatprep.subr.bf16.mxu0 (!%p233_p7), %v890_v17  ;;  %777 = vmatprep.subr.bf16.mxu1 (!%p233_p7), %v890_v17  ;;  %v845_v35 = vld [vmem:[%s986_s10 + $0x40] ss:$8 sps:$4 sm:$0xff] (!%p233_p7)   ;;  %v853_v39 = vld [vmem:[%s986_s10 + $0x50] ss:$8 sps:$4 sm:$0xff] (!%p233_p7)   ;;  %v856_v41 = vld [vmem:[%s986_s10 + $0x64] ss:$8 sps:$4 sm:$0xff] (!%p233_p7)  }
  0x25   : > { %v858_v42 = vld [vmem:[%s986_s10 + $0x20] ss:$8 sps:$4 sm:$0xff]   ;;  %v860_v44 = vld [vmem:[%s986_s10 + $0x34] ss:$8 sps:$4 sm:$0xff]   ;;  %v864_v46 = vld [vmem:[%s986_s10 + $0x30] ss:$8 sps:$4 sm:$0xff]  }
  0x26   : > { %v859_v43 = vld [vmem:[%s986_s10 + $0x60] ss:$8 sps:$4 sm:$0xff]   ;;  %v862_v45 = vld [vmem:[%s986_s10 + $0x74] ss:$8 sps:$4 sm:$0xff]   ;;  %v865_v47 = vld [vmem:[%s986_s10 + $0x70] ss:$8 sps:$4 sm:$0xff]  }
  0x27   : > { %500 = vmatpush1.bf16.msra.mxu0 %v830_v19  ;;  %791 = vmatpush1.bf16.msra.mxu1 %v830_v19  ;;  %v751_v6 = vld [vmem:[%s1082_s2] ss:$0 sm:$0xff]  ;;  %s1088_s9 = smov (!%p264_p8, %s711_s9), 7 }
  0x28   : > { %501 = vmatprep.subr.bf16.mxu0 %v890_v17  ;;  %778 = vmatprep.subr.bf16.mxu1 %v890_v17  ;;  %s712_s14 = sshll.u32 %s1088_s9, 2 }
  0x29   : > { %s267_s17 = scalar_lea.vmem %s1083_s3, %s712_s14 }
  0x2b   : > { %502 = vmatpush1.bf16.msra.mxu0 %v831_v20  ;;  %792 = vmatpush1.bf16.msra.mxu1 %v831_v20 }
  0x2c   : > { %503 = vmatprep.subr.bf16.mxu0 %v890_v17  ;;  %779 = vmatprep.subr.bf16.mxu1 %v890_v17 }
  0x2f   : > { %504 = vmatpush1.bf16.msra.mxu0 %v832_v21  ;;  %793 = vmatpush1.bf16.msra.mxu1 %v832_v21 }
  0x30   : > { %505 = vmatprep.subr.bf16.mxu0 %v890_v17  ;;  %780 = vmatprep.subr.bf16.mxu1 %v890_v17 }
  0x33   : > { %506 = vmatpush1.bf16.msra.mxu0 %v833_v24  ;;  %794 = vmatpush1.bf16.msra.mxu1 %v833_v24 }
  0x34   : > { %507 = vmatprep.subr.bf16.mxu0 %v890_v17  ;;  %781 = vmatprep.subr.bf16.mxu1 %v890_v17 }
  0x37   : > { %508 = vmatpush1.bf16.msra.mxu0 %v834_v25  ;;  %795 = vmatpush1.bf16.msra.mxu1 %v834_v25 }
  0x38   : > { %509 = vmatprep.subr.bf16.mxu0 %v890_v17  ;;  %782 = vmatprep.subr.bf16.mxu1 %v890_v17 }
  0x3b   : > { %510 = vmatpush1.bf16.msra.mxu0 %v835_v26  ;;  %796 = vmatpush1.bf16.msra.mxu1 %v835_v26 }
  0x3c   : > { %511 = vmatprep.subr.bf16.mxu0 %v890_v17  ;;  %783 = vmatprep.subr.bf16.mxu1 %v890_v17 }
  0x3f   : > { %512 = vmatpush1.bf16.msra.mxu0 %v836_v27  ;;  %797 = vmatpush1.bf16.msra.mxu1 %v836_v27 }
  0x40   : > { %513 = vmatprep.subr.bf16.mxu0 %v890_v17  ;;  %784 = vmatprep.subr.bf16.mxu1 %v890_v17 }
  0x43   : > { %514 = vmatpush1.bf16.msra.mxu0 %v837_v28  ;;  %798 = vmatpush1.bf16.msra.mxu1 %v837_v28 }
  0x44   : > { %515 = vmatprep.subr.bf16.mxu0 %v890_v17  ;;  %785 = vmatprep.subr.bf16.mxu1 %v890_v17 }
  0x47   : > { %516 = vmatpush1.bf16.msra.mxu0 %v838_v29  ;;  %799 = vmatpush1.bf16.msra.mxu1 %v838_v29 }
  0x48   : > { %517 = vmatprep.subr.bf16.mxu0 %v890_v17  ;;  %786 = vmatprep.subr.bf16.mxu1 %v890_v17 }
  0x4b   : > { %518 = vmatpush1.bf16.msra.mxu0 %v839_v30  ;;  %800 = vmatpush1.bf16.msra.mxu1 %v839_v30 }
  0x4c   : > { %519 = vmatprep.subr.bf16.mxu0 %v890_v17  ;;  %787 = vmatprep.subr.bf16.mxu1 %v890_v17 }
  0x4f   : > { %520 = vmatpush1.bf16.msra.mxu0 %v840_v31  ;;  %801 = vmatpush1.bf16.msra.mxu1 %v840_v31 }
  0x50   : > { %521 = vmatprep.subr.bf16.mxu0 %v890_v17  ;;  %788 = vmatprep.subr.bf16.mxu1 %v890_v17 }
  0x53   : > { %522 = vmatpush1.bf16.msra.mxu0 %v493_v33  ;;  %802 = vmatpush1.bf16.msra.mxu1 %v493_v33 }
  0x56   : > { %528 = vmatmul.mubr.bf16.vlgmr.msra.gmra.mrb[0].mxu0 %v842_v34  ;;  %560 = vmatmul.mubr.bf16.vlgmr.msra.gmra.mrb[0].mxu1 %v845_v35 }
  0x57   : > { %744 = vmatprep.mubr.msk.bf16.mxu0 %vm466_vm0, %v848_v36  ;;  %748 = vmatprep.mubr.msk.bf16.mxu1 %vm466_vm0, %v850_v37 }
  0x5e   : > { %536 = vmatmul.mubr.bf16.gmra.mrb[4].mxu0 %v852_v38  ;;  %568 = vmatmul.mubr.bf16.gmra.mrb[4].mxu1 %v853_v39 }
  0x5f   : > { %745 = vmatprep.mubr.msk.bf16.mxu0 %vm466_vm0, %v854_v40  ;;  %749 = vmatprep.mubr.msk.bf16.mxu1 %vm466_vm0, %v856_v41 }
  0x66   : > { %544 = vmatmul.mubr.bf16.gmra.mrb[8].mxu0 %v858_v42  ;;  %576 = vmatmul.mubr.bf16.gmra.mrb[8].mxu1 %v859_v43 }
  0x67   : > { %746 = vmatprep.mubr.msk.bf16.mxu0 %vm466_vm0, %v860_v44  ;;  %750 = vmatprep.mubr.msk.bf16.mxu1 %vm466_vm0, %v862_v45 }
  0x6e   : > { %552 = vmatmul.mubr.bf16.gmra.mrb[12].mxu0 %v864_v46  ;;  %584 = vmatmul.mubr.bf16.gmra.mrb[12].mxu1 %v865_v47 }
 0x129   : > { %v529_v48 = vpop.f32.mrb[0].mxu0  ;;  %v561_v49 = vpop.f32.mrb[0].mxu1 }
 0x12a   : > { %v531_v50 = vpop.f32.mrb[1].mxu0  ;;  %v563_v51 = vpop.f32.mrb[1].mxu1 }
 0x12b   : > { %v532_v52 = vpop.f32.mrb[2].mxu0  ;;  %v564_v53 = vpop.f32.mrb[2].mxu1 }
 0x12c   : > { %v534_v54 = vpop.f32.mrb[3].mxu0  ;;  %v566_v55 = vpop.f32.mrb[3].mxu1 }
 0x131   : > { %v537_v56 = vpop.f32.mrb[4].mxu0  ;;  %v569_v57 = vpop.f32.mrb[4].mxu1 }
 0x132   : > { %v539_v58 = vpop.f32.mrb[5].mxu0  ;;  %v571_v59 = vpop.f32.mrb[5].mxu1 }
 0x133   : > { %v540_v60 = vpop.f32.mrb[6].mxu0  ;;  %v572_v61 = vpop.f32.mrb[6].mxu1 }
 0x134   : > { %v542_v62 = vpop.f32.mrb[7].mxu0  ;;  %v574_v63 = vpop.f32.mrb[7].mxu1 }
 0x139   : > { %v545_v0 = vpop.f32.mrb[8].mxu0  ;;  %v577_v1 = vpop.f32.mrb[8].mxu1 }
 0x13a   : > { %v593_v2 = vmax.f32 %v529_v48, %v545_v0  ;;  %v597_v3 = vmax.f32 %v561_v49, %v577_v1  ;;  %v547_v4 = vpop.f32.mrb[9].mxu0  ;;  %v579_v5 = vpop.f32.mrb[9].mxu1 }
 0x13b   : > { %v548_v7 = vpop.f32.mrb[10].mxu0  ;;  %v580_v8 = vpop.f32.mrb[10].mxu1 }
 0x13c   : > { %v601_v9 = vmax.f32 %v593_v2, %v597_v3  ;;  %v594_v10 = vmax.f32 %v532_v52, %v548_v7  ;;  %v598_v11 = vmax.f32 %v564_v53, %v580_v8  ;;  %v550_v12 = vpop.f32.mrb[11].mxu0  ;;  %v582_v13 = vpop.f32.mrb[11].mxu1 }
 0x13e   : > { %v611_v14 = vadd.f32 %v751_v6, %v601_v9  ;;  %v602_v15 = vmax.f32 %v594_v10, %v598_v11 }
 0x140   : > { %v612_v16 = vadd.f32 %v751_v6, %v602_v15  ;;  %v615_v19 = vmax.f32 %v611_v14, 0.0 }
 0x141   : > { %v553_v17 = vpop.f32.mrb[12].mxu0  ;;  %v585_v18 = vpop.f32.mrb[12].mxu1 }
 0x142   : > { %v616_v20 = vmax.f32 %v612_v16, 0.0  ;;  %v595_v21 = vmax.f32 %v537_v56, %v553_v17  ;;  %v599_v22 = vmax.f32 %v569_v57, %v585_v18  ;;  %v555_v23 = vpop.f32.mrb[13].mxu0  ;;  %v587_v24 = vpop.f32.mrb[13].mxu1 }
 0x143   : > { %v556_v25 = vpop.f32.mrb[14].mxu0  ;;  %v588_v26 = vpop.f32.mrb[14].mxu1 }
 0x144   : > { %v767_v27 = vpack.c.bf16 %v616_v20, %v615_v19  ;;  %v603_v28 = vmax.f32 %v595_v21, %v599_v22  ;;  %v596_v29 = vmax.f32 %v540_v60, %v556_v25  ;;  %v600_v30 = vmax.f32 %v572_v61, %v588_v26  ;;  %v558_v31 = vpop.f32.mrb[15].mxu0  ;;  %v590_v32 = vpop.f32.mrb[15].mxu1 }
 0x146   : > { %768 = vst [vmem:[%s267_s17] sm:$0xff] %v767_v27   ;;  %v613_v33 = vadd.f32 %v751_v6, %v603_v28  ;;  %v604_v34 = vmax.f32 %v596_v29, %v600_v30 }
 0x148   : > { %v614_v35 = vadd.f32 %v751_v6, %v604_v34  ;;  %v617_v36 = vmax.f32 %v613_v33, 0.0 }
 0x14a   : > { %v618_v37 = vmax.f32 %v614_v35, 0.0 }
 0x14c   : > { %v772_v38 = vpack.c.bf16 %v618_v37, %v617_v36 }
 0x14e   : > { %774 = vst [vmem:[%s267_s17 + $0x8] sm:$0xff] %v772_v38  }
 0x14f PF: > { %p10_p9 = scmp.ge.s32.totalorder %s928_s16, 4   ;;  %s1084_s12 = smov %s884_s13 }
 0x150   : > { %s1085_s13 = smov %s937_s19  ;;  %s1086_s14 = smov %s928_s16 }
 0x151   :  { %12 = sbr.rel (!%p10_p9) target bundleno = 2 (0x2), region = 105 }

// kernel: tile.23
= control target key start
LH: loop header
LB: loop body
LE: loop exit
PB: predicated region body
PF: predicated region fallthrough
CT: control target
= control target key end

     0   :  { %s22_s0 = inlined_call_operand.vmem [shape: f32[32], index: 0, kind: input, shape index: {}]   ;;  %s23_s1 = inlined_call_operand.vmem [shape: f32[4,32], index: 1, kind: output, shape index: {}]  }
   0x1   :  { %v4_v0 = vld [vmem:[%s22_s0] ss:$0 sm:$0xff] }
   0x2   :  { %5 = vst [vmem:[%s23_s1] sm:$0xf] %v4_v0 }

// kernel: tile.24
= control target key start
LH: loop header
LB: loop body
LE: loop exit
PB: predicated region body
PF: predicated region fallthrough
CT: control target
= control target key end

     0   :  { %vm7_vm0 = vcmask 261120   ;;  %s37_s8 = smov 32   ;;  %s38_s9 = smov 64   ;;  %vm13_vm1 = vcmask 1048320   ;;  %vm19_vm2 = vcmask 785920   ;;  %vm25_vm3 = vcmask 523520   ;;  %s55_s0 = inlined_call_operand.vmem [shape: f32[4,32], index: 0, kind: input, shape index: {}]   ;;  %s56_s1 = inlined_call_operand.vmem [shape: f32[1,128], index: 1, kind: output, shape index: {}]  }
   0x1   :  { %v4_v0 = vld [vmem:[%s55_s0] sm:$0xf]  ;;  %s36_s0 = smov 96  }
   0x2   :  { %5 = vst [vmem:[#allocation1] sm:$0xf] %v4_v0 }
   0x9   :  { %v10_v1 = vld [vmem:[#allocation1 + $0x3] sm:$0x1]   ;;  %v22_v2 = vld [vmem:[#allocation1 + $0x1] sm:$0x1]   ;;  %v6_v3 = vld [vmem:[#allocation1] sm:$0x1]  }
   0xa   :  { %11 = vrot.lane.b32.xlu0 %v10_v1, %s36_s0  ;;  %23 = vrot.lane.b32.xlu1 %v22_v2, %s37_s8  ;;  %v16_v4 = vld [vmem:[#allocation1 + $0x2] sm:$0x1]   ;;  %8 = vst.msk [vmem:[#allocation0] sm:$0x1] %vm7_vm0, %v6_v3  }
   0xe   :  { %17 = vrot.lane.b32.xlu0 %v16_v4, %s38_s9 }
  0x7c   :  { %v12_v5 = vpop.permute.xlu0 %11   ;;  %v24_v6 = vpop.permute.xlu1 %23  }
  0x7d   :  { %14 = vst.msk [vmem:[#allocation0] sm:$0x1] %vm13_vm1, %v12_v5  }
  0x80   :  { %v18_v7 = vpop.permute.xlu0 %17  }
  0x81   :  { %20 = vst.msk [vmem:[#allocation0] sm:$0x1] %vm19_vm2, %v18_v7  }
  0x82   :  { %26 = vst.msk [vmem:[#allocation0] sm:$0x1] %vm25_vm3, %v24_v6  }
  0x89   :  { %v30_v8 = vld [vmem:[#allocation0] sm:$0x1] }
  0x8a   :  { %32 = vst [vmem:[%s56_s1] sm:$0x1] %v30_v8 }

// kernel: lightweight_cnn_forward.5
= control target key start
LH: loop header
LB: loop body
LE: loop exit
PB: predicated region body
PF: predicated region fallthrough
CT: control target
= control target key end

     0   :  { %s1308_s12 = smov 0   ;;  %s1310_s13 = smov 0   ;;  %s1545_s0 = inlined_call_operand.vmem [shape: bf16[4,32,576], index: 0, kind: input, shape index: {}]   ;;  %s1546_s1 = inlined_call_operand.vmem [shape: bf16[576,128], index: 1, kind: input, shape index: {}]   ;;  %s1547_s2 = inlined_call_operand.vmem [shape: f32[1,128], index: 2, kind: input, shape index: {}]   ;;  %s1548_s3 = inlined_call_operand.vmem [shape: bf16[32,128], index: 3, kind: output, shape index: {}]  }
   0x1   :  { %s1312_s14 = smov 0  }
   0x2 LB: > { %s963_s15 = sadd.s32 4294967295, %s1286_s14   ;;  %s1325_s16 = sadd.s32 1, %s1286_s14   ;;  %s1286_s14 = sphi %s1312_s14, %s1551_s14   ;;  %s1282_s13 = sphi %s1310_s13, %s1550_s13   ;;  %s1278_s12 = sphi %s1308_s12, %s1549_s12  }
   0x3   : > { %s17_s17 = ssub.s32 %s1286_s14, %s1325_s16  ;;  %s20_s18 = sadd.s32 1, %s1282_s13 }
   0x4   : > { %p18_p0 = scmp.eq.s32.totalorder %s17_s17, 0  ;;  %p27_p1 = scmp.ne.s32.totalorder %s1282_s13, %s1278_s12 }
   0x5   : > { %p28_p2 = scmp.eq.s32.totalorder %s1286_s14, 0  ;;  %p966_p4 = scmp.ge.s32.totalorder %s1286_s14, 2 }
   0x6   : > { %s1334_s19 = scalar_select %p18_p0, %s1282_s13, %s20_s18  }
   0x7   : > { %p29_p3 = por %p28_p2, %p27_p1  ;;  %127 = sbr.rel (%p966_p4) target bundleno = 32 (0x20), region = 24 }
   0xe   : > { %130 = sbr.rel (!%p29_p3) target bundleno = 32 (0x20), region = 28  ;;  %s132_s20 = sand.u32 (%p29_p3), 1, %s1282_s13  }
   0xf   : > { %s1174_s21 = smul.u32 (%p29_p3), 40, %s1286_s14 }
  0x10   : > { %s1173_s22 = smul.u32 (%p29_p3), 160, %s132_s20 }
  0x11   : > { %s1342_s25 = scalar_lea.vmem (%p29_p3), %s1545_s0, %s1174_s21 }
  0x12   : > { %v153_v0 = vld [vmem:[%s1342_s25] sm:$0xff] (%p29_p3)  ;;  %v155_v1 = vld [vmem:[%s1342_s25 + $0x8] sm:$0xff] (%p29_p3)  ;;  %v157_v2 = vld [vmem:[%s1342_s25 + $0x14] sm:$0xff] (%p29_p3)  ;;  %s1347_s26 = scalar_lea.vmem (%p29_p3), [#allocation2], %s1173_s22 }
  0x13   : > { %154 = vst [vmem:[%s1347_s26] sm:$0xff] (%p29_p3), %v153_v0  ;;  %156 = vst [vmem:[%s1347_s26 + $0x8] sm:$0xff] (%p29_p3), %v155_v1  ;;  %v159_v3 = vld [vmem:[%s1342_s25 + $0x1c] sm:$0xff] (%p29_p3)  ;;  %v161_v4 = vld [vmem:[%s1342_s25 + $0x50] sm:$0xff] (%p29_p3) }
  0x14   : > { %158 = vst [vmem:[%s1347_s26 + $0x14] sm:$0xff] (%p29_p3), %v157_v2  ;;  %v163_v5 = vld [vmem:[%s1342_s25 + $0x58] sm:$0xff] (%p29_p3)  ;;  %160 = vst [vmem:[%s1347_s26 + $0x1c] sm:$0xff] (%p29_p3), %v159_v3  ;;  %v165_v6 = vld [vmem:[%s1342_s25 + $0x64] sm:$0xff] (%p29_p3) }
  0x15   : > { %162 = vst [vmem:[%s1347_s26 + $0x28] sm:$0xff] %v161_v4  ;;  %164 = vst [vmem:[%s1347_s26 + $0x30] sm:$0xff] %v163_v5  ;;  %v167_v7 = vld [vmem:[%s1342_s25 + $0x6c] sm:$0xff]  ;;  %v169_v8 = vld [vmem:[%s1342_s25 + $0xa0] sm:$0xff] }
  0x16   : > { %166 = vst [vmem:[%s1347_s26 + $0x3c] sm:$0xff] %v165_v6  ;;  %168 = vst [vmem:[%s1347_s26 + $0x44] sm:$0xff] %v167_v7  ;;  %v171_v9 = vld [vmem:[%s1342_s25 + $0xa8] sm:$0xff]  ;;  %v173_v10 = vld [vmem:[%s1342_s25 + $0xb4] sm:$0xff] }
  0x17   : > { %170 = vst [vmem:[%s1347_s26 + $0x50] sm:$0xff] %v169_v8  ;;  %v175_v11 = vld [vmem:[%s1342_s25 + $0xbc] sm:$0xff]  ;;  %172 = vst [vmem:[%s1347_s26 + $0x58] sm:$0xff] %v171_v9  ;;  %v177_v12 = vld [vmem:[%s1342_s25 + $0xf0] sm:$0xff] }
  0x18   : > { %174 = vst [vmem:[%s1347_s26 + $0x64] sm:$0xff] %v173_v10  ;;  %176 = vst [vmem:[%s1347_s26 + $0x6c] sm:$0xff] %v175_v11  ;;  %v179_v13 = vld [vmem:[%s1342_s25 + $0xf8] sm:$0xff]  ;;  %v181_v14 = vld [vmem:[%s1342_s25 + $0x104] sm:$0xff] }
  0x19   : > { %178 = vst [vmem:[%s1347_s26 + $0x78] sm:$0xff] %v177_v12  ;;  %180 = vst [vmem:[%s1347_s26 + $0x80] sm:$0xff] %v179_v13  ;;  %v183_v15 = vld [vmem:[%s1342_s25 + $0x10c] sm:$0xff]  ;;  %v972_v17 = vld [vmem:[%s1342_s25 + $0x24] sm:$0xf] }
  0x1a   : > { %182 = vst [vmem:[%s1347_s26 + $0x8c] sm:$0xff] %v181_v14  ;;  %v970_v16 = vld [vmem:[%s1342_s25 + $0x10] sm:$0xf]  ;;  %184 = vst [vmem:[%s1347_s26 + $0x94] sm:$0xff] %v183_v15  ;;  %v974_v18 = vld [vmem:[%s1342_s25 + $0x60] sm:$0xf] }
  0x1b   : > { %971 = vst [vmem:[%s1347_s26 + $0x10] sm:$0xf] %v970_v16  ;;  %973 = vst [vmem:[%s1347_s26 + $0x24] sm:$0xf] %v972_v17  ;;  %v976_v19 = vld [vmem:[%s1342_s25 + $0x74] sm:$0xf] }
  0x1c   : > { %v978_v20 = vld [vmem:[%s1342_s25 + $0xb0] sm:$0xf]  ;;  %975 = vst [vmem:[%s1347_s26 + $0x38] sm:$0xf] %v974_v18  ;;  %977 = vst [vmem:[%s1347_s26 + $0x4c] sm:$0xf] %v976_v19 }
  0x1d   : > { %979 = vst [vmem:[%s1347_s26 + $0x60] sm:$0xf] %v978_v20  ;;  %v980_v21 = vld [vmem:[%s1342_s25 + $0xc4] sm:$0xf]  ;;  %v982_v22 = vld [vmem:[%s1342_s25 + $0x100] sm:$0xf] }
  0x1e   : > { %v984_v23 = vld [vmem:[%s1342_s25 + $0x114] sm:$0xf]  ;;  %981 = vst [vmem:[%s1347_s26 + $0x74] sm:$0xf] %v980_v21  ;;  %983 = vst [vmem:[%s1347_s26 + $0x88] sm:$0xf] %v982_v22 }
  0x1f   : > { %985 = vst [vmem:[%s1347_s26 + $0x9c] sm:$0xf] %v984_v23 }
  0x20 PF: > { %p986_p5 = scmp.ge.s32.totalorder %s1286_s14, 1  ;;  %p212_p6 = scmp.lt.s32.totalorder %s1286_s14, 3 }
  0x22   : > { %p213_p7 = pnand %p986_p5, %p212_p6 }
  0x23   : > { %v1200_v24 = vld [vmem:[%s1546_s1 + $0x40] sm:$0xff] (!%p213_p7)   ;;  %v1204_v28 = vld [vmem:[%s1546_s1 + $0x48] sm:$0xff] (!%p213_p7)   ;;  %v1208_v32 = vld [vmem:[%s1546_s1 + $0x50] sm:$0xff] (!%p213_p7)   ;;  %s219_s4 = sand.u32 (!%p213_p7), 1, %s1278_s12   ;;  %vm662_vm0 = vcmask (!%p213_p7), 523264  }
  0x24   : > { %216 = sbr.rel (%p213_p7) target bundleno = 330 (0x14a), region = 54  ;;  %v1201_v25 = vld [vmem:[%s1546_s1 + $0xc0] sm:$0xff] (!%p213_p7)   ;;  %1061 = vmatprep.subr.bf16.mxu0 (!%p213_p7), %v1200_v24  ;;  %v1205_v29 = vld [vmem:[%s1546_s1 + $0xc8] sm:$0xff] (!%p213_p7)   ;;  %v1209_v33 = vld [vmem:[%s1546_s1 + $0xd0] sm:$0xff] (!%p213_p7)  }
  0x25   : > { %v1202_v26 = vld [vmem:[%s1546_s1] sm:$0xff] (!%p213_p7)   ;;  %1101 = vmatprep.subr.bf16.mxu1 (!%p213_p7), %v1201_v25  ;;  %v1206_v30 = vld [vmem:[%s1546_s1 + $0x8] sm:$0xff] (!%p213_p7)   ;;  %v1210_v34 = vld [vmem:[%s1546_s1 + $0x10] sm:$0xff] (!%p213_p7)   ;;  %s1175_s11 = smul.u32 (!%p213_p7), 160, %s219_s4 }
  0x26   : > { %v1203_v27 = vld [vmem:[%s1546_s1 + $0x80] sm:$0xff] (!%p213_p7)   ;;  %1062 = vmatpush3.bf16.msra.mxu0 (!%p213_p7), %v1202_v26  ;;  %v1207_v31 = vld [vmem:[%s1546_s1 + $0x88] sm:$0xff] (!%p213_p7)   ;;  %v1211_v35 = vld [vmem:[%s1546_s1 + $0x90] sm:$0xff] (!%p213_p7)  }
  0x27   : > { %1102 = vmatpush3.bf16.msra.mxu1 (!%p213_p7), %v1203_v27  ;;  %1063 = vmatprep.subr.bf16.mxu0 (!%p213_p7), %v1204_v28  ;;  %v1212_v36 = vld [vmem:[%s1546_s1 + $0x58] sm:$0xff] (!%p213_p7)   ;;  %v1216_v40 = vld [vmem:[%s1546_s1 + $0x60] sm:$0xff] (!%p213_p7)   ;;  %v1220_v44 = vld [vmem:[%s1546_s1 + $0x68] sm:$0xff] (!%p213_p7)   ;;  %s1493_s29 = scalar_lea.vmem (!%p213_p7), [#allocation2], %s1175_s11  ;;  %s987_s11 = sshll.u32 (!%p213_p7), %s963_s15, 1 }
  0x28   : > { %1103 = vmatprep.subr.bf16.mxu1 (!%p213_p7), %v1205_v29  ;;  %v1213_v37 = vld [vmem:[%s1546_s1 + $0xd8] sm:$0xff] (!%p213_p7)   ;;  %v1217_v41 = vld [vmem:[%s1546_s1 + $0xe0] sm:$0xff] (!%p213_p7)   ;;  %v1221_v45 = vld [vmem:[%s1546_s1 + $0xe8] sm:$0xff] (!%p213_p7)   ;;  %p244_p8 = scmp.lt.s32.totalorder (!%p213_p7), %s987_s11, 3 }
  0x29   : > { %v1214_v38 = vld [vmem:[%s1546_s1 + $0x18] sm:$0xff] (!%p213_p7)   ;;  %v1218_v42 = vld [vmem:[%s1546_s1 + $0x20] sm:$0xff] (!%p213_p7)   ;;  %v1222_v46 = vld [vmem:[%s1546_s1 + $0x28] sm:$0xff] (!%p213_p7)  }
  0x2a   : > { %1064 = vmatpush3.bf16.msra.mxu0 (!%p213_p7), %v1206_v30  ;;  %v1215_v39 = vld [vmem:[%s1546_s1 + $0x98] sm:$0xff] (!%p213_p7)   ;;  %v1219_v43 = vld [vmem:[%s1546_s1 + $0xa0] sm:$0xff] (!%p213_p7)   ;;  %v1223_v47 = vld [vmem:[%s1546_s1 + $0xa8] sm:$0xff] (!%p213_p7)  }
  0x2b   : > { %1104 = vmatpush3.bf16.msra.mxu1 %v1207_v31  ;;  %1065 = vmatprep.subr.bf16.mxu0 %v1208_v32  ;;  %v1224_v48 = vld [vmem:[%s1546_s1 + $0x70] sm:$0xff]   ;;  %v1228_v52 = vld [vmem:[%s1546_s1 + $0x78] sm:$0xff]   ;;  %v1237_v59 = vld [vmem:[%s1493_s29 + $0xc] ss:$20 sps:$4 sm:$0xff]   ;;  %s1553_s11 = smov (!%p244_p8, %s987_s11), 3 }
  0x2c   : > { %1105 = vmatprep.subr.bf16.mxu1 %v1209_v33  ;;  %v1225_v49 = vld [vmem:[%s1546_s1 + $0xf0] sm:$0xff]   ;;  %v1229_v53 = vld [vmem:[%s1546_s1 + $0xf8] sm:$0xff]   ;;  %v1238_v60 = vld [vmem:[%s1546_s1 + $0x100] sm:$0xff]   ;;  %772 = vmatprep.mubr.bf16.mxu1 %v1237_v59  ;;  %s988_s17 = sshll.u32 %s1553_s11, 2 }
  0x2d   : > { %v1226_v50 = vld [vmem:[%s1546_s1 + $0x30] sm:$0xff]   ;;  %v1230_v54 = vld [vmem:[%s1546_s1 + $0x38] sm:$0xff]   ;;  %v1239_v61 = vld [vmem:[%s1493_s29 + $0x2c] ss:$20 sps:$4 sm:$0xff]   ;;  %s247_s20 = scalar_lea.vmem %s1548_s3, %s988_s17 }
  0x2e   : > { %1066 = vmatpush3.bf16.msra.mxu0 %v1210_v34  ;;  %v1227_v51 = vld [vmem:[%s1546_s1 + $0xb0] sm:$0xff]   ;;  %v1231_v55 = vld [vmem:[%s1546_s1 + $0xb8] sm:$0xff]   ;;  %v1245_v63 = vld [vmem:[%s1546_s1 + $0x108] sm:$0xff]  }
  0x2f   : > { %1106 = vmatpush3.bf16.msra.mxu1 %v1211_v35  ;;  %1067 = vmatprep.subr.bf16.mxu0 %v1212_v36  ;;  %v1232_v56 = vld [vmem:[%s1493_s29] ss:$20 sps:$4 sm:$0xff]   ;;  %v1234_v57 = vld [vmem:[%s1493_s29 + $0x4] ss:$20 sps:$4 sm:$0xff]   ;;  %v1235_v58 = vld [vmem:[%s1493_s29 + $0x8] ss:$20 sps:$4 sm:$0xff]  }
  0x30   : > { %1107 = vmatprep.subr.bf16.mxu1 %v1213_v37  ;;  %707 = vmatprep.mubr.bf16.mxu0 %v1234_v57  ;;  %v1241_v62 = vld [vmem:[%s1493_s29 + $0x34] ss:$20 sps:$4 sm:$0xff]   ;;  %v1244_v1 = vld [vmem:[%s1493_s29 + $0x30] ss:$20 sps:$4 sm:$0xff]   ;;  %v1259_v5 = vld [vmem:[%s1546_s1 + $0x118] sm:$0xff]  }
  0x31   : > { %v1243_v0 = vld [vmem:[%s1493_s29 + $0x28] ss:$20 sps:$4 sm:$0xff]   ;;  %v1252_v4 = vld [vmem:[%s1546_s1 + $0x110] sm:$0xff]   ;;  %v1251_v7 = vld [vmem:[%s1493_s29 + $0x58] ss:$20 sps:$4 sm:$0xff]  }
  0x32   : > { %1068 = vmatpush3.bf16.msra.mxu0 %v1214_v38  ;;  %v1246_v2 = vld [vmem:[%s1493_s29 + $0x54] ss:$20 sps:$4 sm:$0xff]   ;;  %v1248_v3 = vld [vmem:[%s1493_s29 + $0x5c] ss:$20 sps:$4 sm:$0xff]   ;;  %v1255_v9 = vld [vmem:[%s1493_s29 + $0x84] ss:$20 sps:$4 sm:$0xff]  }
  0x33   : > { %1108 = vmatpush3.bf16.msra.mxu1 %v1215_v39  ;;  %1069 = vmatprep.subr.bf16.mxu0 %v1216_v40  ;;  %v1250_v6 = vld [vmem:[%s1493_s29 + $0x50] ss:$20 sps:$4 sm:$0xff]   ;;  %v1257_v10 = vld [vmem:[%s1493_s29 + $0x78] ss:$20 sps:$4 sm:$0xff]   ;;  %v1258_v11 = vld [vmem:[%s1493_s29 + $0x80] ss:$20 sps:$4 sm:$0xff]  }
  0x34   : > { %1109 = vmatprep.subr.bf16.mxu1 %v1217_v41  ;;  %v1253_v8 = vld [vmem:[%s1493_s29 + $0x7c] ss:$20 sps:$4 sm:$0xff]   ;;  %v1261_v13 = vld [vmem:[%s1493_s29 + $0x60] ss:$20 sps:$4 sm:$0xff]   ;;  %v1262_v14 = vld [vmem:[%s1493_s29 + $0x38] ss:$20 sps:$4 sm:$0xff]  }
  0x35   : > { %v1260_v12 = vld [vmem:[%s1493_s29 + $0x10] ss:$20 sps:$4 sm:$0xff]   ;;  %v1263_v15 = vld [vmem:[%s1493_s29 + $0x88] ss:$20 sps:$4 sm:$0xff]  }
  0x36   : > { %1070 = vmatpush3.bf16.msra.mxu0 %v1218_v42 }
  0x37   : > { %1110 = vmatpush3.bf16.msra.mxu1 %v1219_v43  ;;  %1071 = vmatprep.subr.bf16.mxu0 %v1220_v44 }
  0x38   : > { %1111 = vmatprep.subr.bf16.mxu1 %v1221_v45 }
  0x3a   : > { %1072 = vmatpush3.bf16.msra.mxu0 %v1222_v46 }
  0x3b   : > { %1112 = vmatpush3.bf16.msra.mxu1 %v1223_v47  ;;  %1073 = vmatprep.subr.bf16.mxu0 %v1224_v48 }
  0x3c   : > { %1113 = vmatprep.subr.bf16.mxu1 %v1225_v49 }
  0x3e   : > { %1074 = vmatpush3.bf16.msra.mxu0 %v1226_v50 }
  0x3f   : > { %1114 = vmatpush3.bf16.msra.mxu1 %v1227_v51  ;;  %1075 = vmatprep.subr.bf16.mxu0 %v1228_v52 }
  0x40   : > { %1115 = vmatprep.subr.bf16.mxu1 %v1229_v53 }
  0x42   : > { %1076 = vmatpush3.bf16.msra.mxu0 %v1230_v54 }
  0x43   : > { %1116 = vmatpush3.bf16.msra.mxu1 %v1231_v55  ;;  %1149 = vmatprep.subr.bf16.mxu0 %v1238_v60 }
  0x44   : > { %1165 = vmatprep.subr.bf16.mxu1 %v1238_v60 }
  0x45   : > { %708 = vmatmul.mubr.bf16.vlgmr.msra.gmra.mrb[0].mxu0 %v1232_v56 }
  0x46   : > { %773 = vmatmul.mubr.bf16.vlgmr.msra.gmra.mrb[0].mxu1 %v1235_v58  ;;  %1150 = vmatpush3.bf16.msra.mxu0 %v1238_v60 }
  0x47   : > { %1169 = vmatpush3.bf16.msra.mxu1 %v1238_v60  ;;  %715 = vmatprep.mubr.bf16.mxu0 %v1239_v61 }
  0x48   : > { %780 = vmatprep.mubr.bf16.mxu1 %v1241_v62  ;;  %1151 = vmatprep.subr.bf16.mxu0 %v1245_v63 }
  0x49   : > { %1166 = vmatprep.subr.bf16.mxu1 %v1245_v63 }
  0x4a   : > { %1152 = vmatpush3.bf16.msra.mxu0 %v1245_v63 }
  0x4b   : > { %1170 = vmatpush3.bf16.msra.mxu1 %v1245_v63  ;;  %1153 = vmatprep.subr.bf16.mxu0 %v1252_v4 }
  0x4c   : > { %1167 = vmatprep.subr.bf16.mxu1 %v1252_v4 }
  0x4d   : > { %716 = vmatmul.mubr.bf16.gmra.mrb[4].mxu0 %v1243_v0 }
  0x4e   : > { %781 = vmatmul.mubr.bf16.gmra.mrb[4].mxu1 %v1244_v1  ;;  %723 = vmatprep.mubr.bf16.mxu0 %v1246_v2 }
  0x4f   : > { %788 = vmatprep.mubr.bf16.mxu1 %v1248_v3  ;;  %1154 = vmatpush3.bf16.msra.mxu0 %v1252_v4 }
  0x50   : > { %1171 = vmatpush3.bf16.msra.mxu1 %v1252_v4  ;;  %1155 = vmatprep.subr.bf16.mxu0 %v1259_v5 }
  0x51   : > { %1168 = vmatprep.subr.bf16.mxu1 %v1259_v5 }
  0x53   : > { %1156 = vmatpush3.bf16.msra.mxu0 %v1259_v5 }
  0x54   : > { %1172 = vmatpush3.bf16.msra.mxu1 %v1259_v5 }
  0x55   : > { %724 = vmatmul.mubr.bf16.gmra.mrb[8].mxu0 %v1250_v6 }
  0x56   : > { %789 = vmatmul.mubr.bf16.gmra.mrb[8].mxu1 %v1251_v7  ;;  %731 = vmatprep.mubr.bf16.mxu0 %v1253_v8 }
  0x57   : > { %796 = vmatprep.mubr.bf16.mxu1 %v1255_v9 }
  0x5d   : > { %732 = vmatmul.mubr.bf16.gmra.mrb[12].mxu0 %v1257_v10 }
  0x5e   : > { %797 = vmatmul.mubr.bf16.gmra.mrb[12].mxu1 %v1258_v11  ;;  %1157 = vmatprep.mubr.msk.bf16.mxu0 %vm662_vm0, %v1260_v12 }
  0x5f   : > { %1161 = vmatprep.mubr.msk.bf16.mxu1 %vm662_vm0, %v1261_v13 }
  0x65   : > { %1158 = vmatmul.mubr.msk.bf16.vlgmr.msra.gmra.mrb[16].mxu0 %vm662_vm0, %v1262_v14 }
  0x66   : > { %1162 = vmatmul.mubr.msk.bf16.vlgmr.msra.gmra.mrb[16].mxu1 %vm662_vm0, %v1263_v15 }
 0x118   : > { %v1077_v16 = vpop.f32.mrb[0].mxu0 }
 0x119   : > { %v1117_v17 = vpop.f32.mrb[0].mxu1  ;;  %v1078_v18 = vpop.f32.mrb[1].mxu0 }
 0x11a   : > { %v1079_v19 = vadd.f32 %v1078_v18, %v1077_v16  ;;  %v1118_v20 = vpop.f32.mrb[1].mxu1  ;;  %v1080_v21 = vpop.f32.mrb[2].mxu0 }
 0x11b   : > { %v1119_v22 = vadd.f32 %v1118_v20, %v1117_v17  ;;  %v1120_v23 = vpop.f32.mrb[2].mxu1  ;;  %v1081_v24 = vpop.f32.mrb[3].mxu0 }
 0x11c   : > { %v1082_v25 = vadd.f32 %v1081_v24, %v1080_v21  ;;  %v1121_v26 = vpop.f32.mrb[3].mxu1 }
 0x11d   : > { %v1122_v27 = vadd.f32 %v1121_v26, %v1120_v23  ;;  %v775_v28 = vadd.f32 %v1119_v22, %v1079_v19  ;;  %v1049_v26 = vld [vmem:[%s1547_s2] ss:$0 sm:$0xff] }
 0x11f   : > { %v778_v29 = vadd.f32 %v1122_v27, %v1082_v25 }
 0x120   : > { %v1083_v30 = vpop.f32.mrb[4].mxu0 }
 0x121   : > { %v1123_v31 = vpop.f32.mrb[4].mxu1  ;;  %v1084_v32 = vpop.f32.mrb[5].mxu0 }
 0x122   : > { %v1085_v33 = vadd.f32 %v1084_v32, %v1083_v30  ;;  %v1124_v34 = vpop.f32.mrb[5].mxu1  ;;  %v1086_v35 = vpop.f32.mrb[6].mxu0 }
 0x123   : > { %v1125_v36 = vadd.f32 %v1124_v34, %v1123_v31  ;;  %v1126_v37 = vpop.f32.mrb[6].mxu1  ;;  %v1087_v38 = vpop.f32.mrb[7].mxu0 }
 0x124   : > { %v1088_v39 = vadd.f32 %v1087_v38, %v1086_v35  ;;  %v1127_v40 = vpop.f32.mrb[7].mxu1 }
 0x125   : > { %v1128_v41 = vadd.f32 %v1127_v40, %v1126_v37  ;;  %v783_v42 = vadd.f32 %v1125_v36, %v1085_v33 }
 0x127   : > { %v786_v43 = vadd.f32 %v1128_v41, %v1088_v39 }
 0x128   : > { %v1089_v44 = vpop.f32.mrb[8].mxu0 }
 0x129   : > { %v1129_v45 = vpop.f32.mrb[8].mxu1  ;;  %v1090_v46 = vpop.f32.mrb[9].mxu0 }
 0x12a   : > { %v1091_v47 = vadd.f32 %v1090_v46, %v1089_v44  ;;  %v1130_v48 = vpop.f32.mrb[9].mxu1  ;;  %v1092_v49 = vpop.f32.mrb[10].mxu0 }
 0x12b   : > { %v1131_v50 = vadd.f32 %v1130_v48, %v1129_v45  ;;  %v1132_v51 = vpop.f32.mrb[10].mxu1  ;;  %v1093_v52 = vpop.f32.mrb[11].mxu0 }
 0x12c   : > { %v1094_v53 = vadd.f32 %v1093_v52, %v1092_v49  ;;  %v1133_v54 = vpop.f32.mrb[11].mxu1 }
 0x12d   : > { %v1134_v55 = vadd.f32 %v1133_v54, %v1132_v51  ;;  %v791_v56 = vadd.f32 %v1131_v50, %v1091_v47 }
 0x12f   : > { %v794_v57 = vadd.f32 %v1134_v55, %v1094_v53 }
 0x130   : > { %v1095_v58 = vpop.f32.mrb[12].mxu0 }
 0x131   : > { %v1135_v59 = vpop.f32.mrb[12].mxu1  ;;  %v1096_v60 = vpop.f32.mrb[13].mxu0 }
 0x132   : > { %v1097_v61 = vadd.f32 %v1096_v60, %v1095_v58  ;;  %v1136_v62 = vpop.f32.mrb[13].mxu1  ;;  %v1098_v63 = vpop.f32.mrb[14].mxu0 }
 0x133   : > { %v1137_v0 = vadd.f32 %v1136_v62, %v1135_v59  ;;  %v1138_v1 = vpop.f32.mrb[14].mxu1  ;;  %v1099_v2 = vpop.f32.mrb[15].mxu0 }
 0x134   : > { %v1100_v3 = vadd.f32 %v1099_v2, %v1098_v63  ;;  %v1139_v4 = vpop.f32.mrb[15].mxu1 }
 0x135   : > { %v1140_v5 = vadd.f32 %v1139_v4, %v1138_v1  ;;  %v799_v6 = vadd.f32 %v1137_v0, %v1097_v61 }
 0x137   : > { %v802_v7 = vadd.f32 %v1140_v5, %v1100_v3 }
 0x138   : > { %v1159_v8 = vpop.f32.mrb[16].mxu0 }
 0x139   : > { %v848_v9 = vadd.f32 %v1159_v8, %v783_v42  ;;  %v1163_v10 = vpop.f32.mrb[16].mxu1  ;;  %v839_v11 = vpop.f32.mrb[17].mxu0 }
 0x13a   : > { %v864_v12 = vadd.f32 %v1163_v10, %v799_v6  ;;  %v840_v13 = vadd.f32 %v839_v11, %v775_v28  ;;  %v855_v14 = vpop.f32.mrb[17].mxu1  ;;  %v1160_v15 = vpop.f32.mrb[18].mxu0 }
 0x13b   : > { %v856_v16 = vadd.f32 %v855_v14, %v791_v56  ;;  %v851_v17 = vadd.f32 %v1160_v15, %v786_v43  ;;  %v1164_v18 = vpop.f32.mrb[18].mxu1  ;;  %v842_v19 = vpop.f32.mrb[19].mxu0 }
 0x13c   : > { %v871_v20 = vmax.f32 %v840_v13, %v848_v9  ;;  %v867_v21 = vadd.f32 %v1164_v18, %v802_v7  ;;  %v843_v22 = vadd.f32 %v842_v19, %v778_v29  ;;  %v858_v23 = vpop.f32.mrb[19].mxu1 }
 0x13d   : > { %v873_v24 = vmax.f32 %v856_v16, %v864_v12  ;;  %v859_v25 = vadd.f32 %v858_v23, %v794_v57 }
 0x13e   : > { %v872_v27 = vmax.f32 %v843_v22, %v851_v17 }
 0x13f   : > { %v875_v30 = vmax.f32 %v871_v20, %v873_v24  ;;  %v874_v28 = vmax.f32 %v859_v25, %v867_v21 }
 0x141   : > { %v883_v31 = vadd.f32 %v1049_v26, %v875_v30  ;;  %v876_v32 = vmax.f32 %v872_v27, %v874_v28 }
 0x143   : > { %v884_v33 = vadd.f32 %v1049_v26, %v876_v32  ;;  %v885_v34 = vmax.f32 %v883_v31, 0.0 }
 0x145   : > { %v886_v35 = vmax.f32 %v884_v33, 0.0 }
 0x147   : > { %v1059_v29 = vpack.c.bf16 %v886_v35, %v885_v34 }
 0x149   : > { %1060 = vst [vmem:[%s247_s20] sm:$0xff] %v1059_v29  }
 0x14a PF: > { %p10_p9 = scmp.ge.s32.totalorder %s1325_s16, 4   ;;  %s1549_s12 = smov %s1282_s13 }
 0x14b   : > { %s1550_s13 = smov %s1334_s19  ;;  %s1551_s14 = smov %s1325_s16 }
 0x14c   :  { %12 = sbr.rel (!%p10_p9) target bundleno = 2 (0x2), region = 99 }

// kernel: tile.28
= control target key start
LH: loop header
LB: loop body
LE: loop exit
PB: predicated region body
PF: predicated region fallthrough
CT: control target
= control target key end

     0   :  { %s22_s0 = inlined_call_operand.vmem [shape: f32[64], index: 0, kind: input, shape index: {}]   ;;  %s23_s1 = inlined_call_operand.vmem [shape: f32[2,64], index: 1, kind: output, shape index: {}]  }
   0x1   :  { %v4_v0 = vld [vmem:[%s22_s0] ss:$0 sm:$0xff] }
   0x2   :  { %5 = vst [vmem:[%s23_s1] sm:$0x3] %v4_v0 }

// kernel: tile.29
= control target key start
LH: loop header
LB: loop body
LE: loop exit
PB: predicated region body
PF: predicated region fallthrough
CT: control target
= control target key end

     0   :  { %vm7_vm0 = vcmask 523264   ;;  %vm13_vm1 = vcmask 1048064   ;;  %s39_s0 = inlined_call_operand.vmem [shape: f32[2,64], index: 0, kind: input, shape index: {}]   ;;  %s40_s1 = inlined_call_operand.vmem [shape: f32[1,128], index: 1, kind: output, shape index: {}]  }
   0x1   :  { %v4_v0 = vld [vmem:[%s39_s0] sm:$0x3]  ;;  %s22_s0 = smov 64  }
   0x2   :  { %5 = vst [vmem:[#allocation1] sm:$0x3] %v4_v0 }
   0x9   :  { %v10_v1 = vld [vmem:[#allocation1 + $0x1] sm:$0x1]   ;;  %v6_v2 = vld [vmem:[#allocation1] sm:$0x1]  }
   0xa   :  { %11 = vrot.lane.b32.xlu0 %v10_v1, %s22_s0  ;;  %8 = vst.msk [vmem:[#allocation0] sm:$0x1] %vm7_vm0, %v6_v2  }
  0x7c   :  { %v12_v3 = vpop.permute.xlu0 %11  }
  0x7d   :  { %14 = vst.msk [vmem:[#allocation0] sm:$0x1] %vm13_vm1, %v12_v3  }
  0x84   :  { %v18_v4 = vld [vmem:[#allocation0] sm:$0x1] }
  0x85   :  { %20 = vst [vmem:[%s40_s1] sm:$0x1] %v18_v4 }

// kernel: lightweight_cnn_forward.6
= control target key start
LH: loop header
LB: loop body
LE: loop exit
PB: predicated region body
PF: predicated region fallthrough
CT: control target
= control target key end

     0   :  { %s1070_s12 = smov 0   ;;  %s1072_s13 = smov 0   ;;  %s1247_s0 = inlined_call_operand.vmem [shape: bf16[4,16,576], index: 0, kind: input, shape index: {}]   ;;  %s1248_s1 = inlined_call_operand.vmem [shape: bf16[576,128], index: 1, kind: input, shape index: {}]   ;;  %s1249_s2 = inlined_call_operand.vmem [shape: f32[1,128], index: 2, kind: input, shape index: {}]   ;;  %s1250_s3 = inlined_call_operand.vmem [shape: bf16[16,128], index: 3, kind: output, shape index: {}]  }
   0x1   :  { %s1074_s14 = smov 0  }
   0x2 LB: > { %s809_s15 = sadd.s32 4294967295, %s1048_s14   ;;  %s1087_s16 = sadd.s32 1, %s1048_s14   ;;  %s1048_s14 = sphi %s1074_s14, %s1253_s14   ;;  %s1044_s13 = sphi %s1072_s13, %s1252_s13   ;;  %s1040_s12 = sphi %s1070_s12, %s1251_s12  }
   0x3   : > { %s17_s17 = ssub.s32 %s1048_s14, %s1087_s16  ;;  %s20_s18 = sadd.s32 1, %s1044_s13 }
   0x4   : > { %p18_p0 = scmp.eq.s32.totalorder %s17_s17, 0  ;;  %p27_p1 = scmp.ne.s32.totalorder %s1044_s13, %s1040_s12 }
   0x5   : > { %p28_p2 = scmp.eq.s32.totalorder %s1048_s14, 0  ;;  %p812_p4 = scmp.ge.s32.totalorder %s1048_s14, 2 }
   0x6   : > { %s1096_s19 = scalar_select %p18_p0, %s1044_s13, %s20_s18  }
   0x7   : > { %p29_p3 = por %p28_p2, %p27_p1  ;;  %127 = sbr.rel (%p812_p4) target bundleno = 25 (0x19), region = 24 }
   0xe   : > { %130 = sbr.rel (!%p29_p3) target bundleno = 25 (0x19), region = 28  ;;  %s132_s20 = sand.u32 (%p29_p3), 1, %s1044_s13  }
   0xf   : > { %s950_s21 = smul.u32 (%p29_p3), 20, %s1048_s14 }
  0x10   : > { %s949_s22 = smul.u32 (%p29_p3), 80, %s132_s20 }
  0x11   : > { %s137_s25 = scalar_lea.vmem (%p29_p3), %s1247_s0, %s950_s21 }
  0x12   : > { %v152_v0 = vld [vmem:[%s137_s25] sm:$0xff] (%p29_p3)  ;;  %v154_v1 = vld [vmem:[%s137_s25 + $0x8] sm:$0xff] (%p29_p3)  ;;  %s134_s26 = scalar_lea.vmem (%p29_p3), [#allocation2], %s949_s22  ;;  %v158_v3 = vld [vmem:[%s137_s25 + $0x30] sm:$0xff] (%p29_p3) }
  0x13   : > { %v156_v2 = vld [vmem:[%s137_s25 + $0x28] sm:$0xff] (%p29_p3)  ;;  %153 = vst [vmem:[%s134_s26] sm:$0xff] (%p29_p3), %v152_v0  ;;  %155 = vst [vmem:[%s134_s26 + $0x8] sm:$0xff] (%p29_p3), %v154_v1  ;;  %v160_v4 = vld [vmem:[%s137_s25 + $0x50] sm:$0xff] (%p29_p3) }
  0x14   : > { %157 = vst [vmem:[%s134_s26 + $0x14] sm:$0xff] (%p29_p3), %v156_v2  ;;  %v162_v5 = vld [vmem:[%s137_s25 + $0x58] sm:$0xff] (%p29_p3)  ;;  %159 = vst [vmem:[%s134_s26 + $0x1c] sm:$0xff] (%p29_p3), %v158_v3  ;;  %v166_v7 = vld [vmem:[%s137_s25 + $0x80] sm:$0xff] (%p29_p3) }
  0x15   : > { %161 = vst [vmem:[%s134_s26 + $0x28] sm:$0xff] %v160_v4  ;;  %163 = vst [vmem:[%s134_s26 + $0x30] sm:$0xff] %v162_v5  ;;  %v164_v6 = vld [vmem:[%s137_s25 + $0x78] sm:$0xff]  ;;  %v814_v8 = vld [vmem:[%s137_s25 + $0x10] sm:$0xf] }
  0x16   : > { %165 = vst [vmem:[%s134_s26 + $0x3c] sm:$0xff] %v164_v6  ;;  %167 = vst [vmem:[%s134_s26 + $0x44] sm:$0xff] %v166_v7  ;;  %v816_v9 = vld [vmem:[%s137_s25 + $0x38] sm:$0xf]  ;;  %v818_v10 = vld [vmem:[%s137_s25 + $0x60] sm:$0xf] }
  0x17   : > { %815 = vst [vmem:[%s134_s26 + $0x10] sm:$0xf] %v814_v8  ;;  %v820_v11 = vld [vmem:[%s137_s25 + $0x88] sm:$0xf]  ;;  %817 = vst [vmem:[%s134_s26 + $0x24] sm:$0xf] %v816_v9 }
  0x18   : > { %819 = vst [vmem:[%s134_s26 + $0x38] sm:$0xf] %v818_v10  ;;  %821 = vst [vmem:[%s134_s26 + $0x4c] sm:$0xf] %v820_v11 }
  0x19 PF: > { %p822_p5 = scmp.ge.s32.totalorder %s1048_s14, 1  ;;  %p187_p6 = scmp.lt.s32.totalorder %s1048_s14, 3 }
  0x1b   : > { %p188_p7 = pnand %p822_p5, %p187_p6 }
  0x1c   : > { %v976_v12 = vld [vmem:[%s1248_s1 + $0x40] sm:$0xff] (!%p188_p7)   ;;  %v980_v16 = vld [vmem:[%s1248_s1 + $0x48] sm:$0xff] (!%p188_p7)   ;;  %v984_v20 = vld [vmem:[%s1248_s1 + $0x50] sm:$0xff] (!%p188_p7)   ;;  %s194_s4 = sand.u32 (!%p188_p7), 1, %s1040_s12   ;;  %vm571_vm0 = vcmask (!%p188_p7), 523264   ;;  %p216_p8 = scmp.lt.s32.totalorder (!%p188_p7), %s809_s15, 1 }
  0x1d   : > { %191 = sbr.rel (%p188_p7) target bundleno = 309 (0x135), region = 54  ;;  %v977_v13 = vld [vmem:[%s1248_s1 + $0xc0] sm:$0xff] (!%p188_p7)   ;;  %875 = vmatprep.subr.bf16.mxu0 (!%p188_p7), %v976_v12  ;;  %v981_v17 = vld [vmem:[%s1248_s1 + $0xc8] sm:$0xff] (!%p188_p7)   ;;  %v985_v21 = vld [vmem:[%s1248_s1 + $0xd0] sm:$0xff] (!%p188_p7)  }
  0x1e   : > { %v978_v14 = vld [vmem:[%s1248_s1] sm:$0xff] (!%p188_p7)   ;;  %903 = vmatprep.subr.bf16.mxu1 (!%p188_p7), %v977_v13  ;;  %v982_v18 = vld [vmem:[%s1248_s1 + $0x8] sm:$0xff] (!%p188_p7)   ;;  %v986_v22 = vld [vmem:[%s1248_s1 + $0x10] sm:$0xff] (!%p188_p7)   ;;  %s951_s11 = smul.u32 (!%p188_p7), 80, %s194_s4 }
  0x1f   : > { %v979_v15 = vld [vmem:[%s1248_s1 + $0x80] sm:$0xff] (!%p188_p7)   ;;  %876 = vmatpush3.bf16.msra.mxu0 (!%p188_p7), %v978_v14  ;;  %v983_v19 = vld [vmem:[%s1248_s1 + $0x88] sm:$0xff] (!%p188_p7)   ;;  %v987_v23 = vld [vmem:[%s1248_s1 + $0x90] sm:$0xff] (!%p188_p7)  }
  0x20   : > { %904 = vmatpush3.bf16.msra.mxu1 (!%p188_p7), %v979_v15  ;;  %877 = vmatprep.subr.bf16.mxu0 (!%p188_p7), %v980_v16  ;;  %v988_v24 = vld [vmem:[%s1248_s1 + $0x58] sm:$0xff] (!%p188_p7)   ;;  %v992_v28 = vld [vmem:[%s1248_s1 + $0x60] sm:$0xff] (!%p188_p7)   ;;  %v996_v32 = vld [vmem:[%s1248_s1 + $0x68] sm:$0xff] (!%p188_p7)   ;;  %s1203_s29 = scalar_lea.vmem (!%p188_p7), [#allocation2], %s951_s11 }
  0x21   : > { %905 = vmatprep.subr.bf16.mxu1 (!%p188_p7), %v981_v17  ;;  %v989_v25 = vld [vmem:[%s1248_s1 + $0xd8] sm:$0xff] (!%p188_p7)   ;;  %v993_v29 = vld [vmem:[%s1248_s1 + $0xe0] sm:$0xff] (!%p188_p7)   ;;  %v997_v33 = vld [vmem:[%s1248_s1 + $0xe8] sm:$0xff] (!%p188_p7)  }
  0x22   : > { %v990_v26 = vld [vmem:[%s1248_s1 + $0x18] sm:$0xff] (!%p188_p7)   ;;  %v994_v30 = vld [vmem:[%s1248_s1 + $0x20] sm:$0xff] (!%p188_p7)   ;;  %v998_v34 = vld [vmem:[%s1248_s1 + $0x28] sm:$0xff] (!%p188_p7)  }
  0x23   : > { %878 = vmatpush3.bf16.msra.mxu0 (!%p188_p7), %v982_v18  ;;  %v991_v27 = vld [vmem:[%s1248_s1 + $0x98] sm:$0xff] (!%p188_p7)   ;;  %v995_v31 = vld [vmem:[%s1248_s1 + $0xa0] sm:$0xff] (!%p188_p7)   ;;  %v999_v35 = vld [vmem:[%s1248_s1 + $0xa8] sm:$0xff] (!%p188_p7)  }
  0x24   : > { %906 = vmatpush3.bf16.msra.mxu1 %v983_v19  ;;  %879 = vmatprep.subr.bf16.mxu0 %v984_v20  ;;  %v1000_v36 = vld [vmem:[%s1248_s1 + $0x70] sm:$0xff]   ;;  %v1004_v40 = vld [vmem:[%s1248_s1 + $0x78] sm:$0xff]   ;;  %v1014_v48 = vld [vmem:[%s1248_s1 + $0x100] sm:$0xff]   ;;  %s1255_s15 = smov (!%p216_p8, %s809_s15), 1 }
  0x25   : > { %907 = vmatprep.subr.bf16.mxu1 %v985_v21  ;;  %v1001_v37 = vld [vmem:[%s1248_s1 + $0xf0] sm:$0xff]   ;;  %v1005_v41 = vld [vmem:[%s1248_s1 + $0xf8] sm:$0xff]   ;;  %v1015_v49 = vld [vmem:[%s1248_s1 + $0x108] sm:$0xff]   ;;  %s823_s18 = sshll.u32 %s1255_s15, 2 }
  0x26   : > { %v1002_v38 = vld [vmem:[%s1248_s1 + $0x30] sm:$0xff]   ;;  %v1006_v42 = vld [vmem:[%s1248_s1 + $0x38] sm:$0xff]   ;;  %s219_s21 = scalar_lea.vmem %s1250_s3, %s823_s18 }
  0x27   : > { %880 = vmatpush3.bf16.msra.mxu0 %v986_v22  ;;  %v1003_v39 = vld [vmem:[%s1248_s1 + $0xb0] sm:$0xff]   ;;  %v1007_v43 = vld [vmem:[%s1248_s1 + $0xb8] sm:$0xff]  }
  0x28   : > { %908 = vmatpush3.bf16.msra.mxu1 %v987_v23  ;;  %881 = vmatprep.subr.bf16.mxu0 %v988_v24  ;;  %v1008_v44 = vld [vmem:[%s1203_s29] ss:$20 sps:$4 sm:$0xff]   ;;  %v1010_v45 = vld [vmem:[%s1203_s29 + $0x4] ss:$20 sps:$4 sm:$0xff]   ;;  %v1011_v46 = vld [vmem:[%s1203_s29 + $0x8] ss:$20 sps:$4 sm:$0xff]  }
  0x29   : > { %909 = vmatprep.subr.bf16.mxu1 %v989_v25  ;;  %v1013_v47 = vld [vmem:[%s1203_s29 + $0xc] ss:$20 sps:$4 sm:$0xff]   ;;  %610 = vmatprep.mubr.bf16.mxu0 %v1010_v45  ;;  %v1018_v51 = vld [vmem:[%s1203_s29 + $0x34] ss:$20 sps:$4 sm:$0xff]   ;;  %v1021_v54 = vld [vmem:[%s1203_s29 + $0x30] ss:$20 sps:$4 sm:$0xff]  }
  0x2a   : > { %659 = vmatprep.mubr.bf16.mxu1 %v1013_v47  ;;  %v1016_v50 = vld [vmem:[%s1203_s29 + $0x2c] ss:$20 sps:$4 sm:$0xff]   ;;  %v1020_v52 = vld [vmem:[%s1203_s29 + $0x28] ss:$20 sps:$4 sm:$0xff]   ;;  %v1024_v55 = vld [vmem:[%s1203_s29 + $0x10] ss:$20 sps:$4 sm:$0xff]  }
  0x2b   : > { %882 = vmatpush3.bf16.msra.mxu0 %v990_v26  ;;  %v1022_v53 = vld [vmem:[%s1248_s1 + $0x110] sm:$0xff]   ;;  %v1023_v56 = vld [vmem:[%s1248_s1 + $0x118] sm:$0xff]   ;;  %v872_v23 = vld [vmem:[%s1249_s2] ss:$0 sm:$0xff] }
  0x2c   : > { %910 = vmatpush3.bf16.msra.mxu1 %v991_v27  ;;  %883 = vmatprep.subr.bf16.mxu0 %v992_v28  ;;  %v1025_v57 = vld [vmem:[%s1203_s29 + $0x38] ss:$20 sps:$4 sm:$0xff]  }
  0x2d   : > { %911 = vmatprep.subr.bf16.mxu1 %v993_v29 }
  0x2f   : > { %884 = vmatpush3.bf16.msra.mxu0 %v994_v30 }
  0x30   : > { %912 = vmatpush3.bf16.msra.mxu1 %v995_v31  ;;  %885 = vmatprep.subr.bf16.mxu0 %v996_v32 }
  0x31   : > { %913 = vmatprep.subr.bf16.mxu1 %v997_v33 }
  0x33   : > { %886 = vmatpush3.bf16.msra.mxu0 %v998_v34 }
  0x34   : > { %914 = vmatpush3.bf16.msra.mxu1 %v999_v35  ;;  %887 = vmatprep.subr.bf16.mxu0 %v1000_v36 }
  0x35   : > { %915 = vmatprep.subr.bf16.mxu1 %v1001_v37 }
  0x37   : > { %888 = vmatpush3.bf16.msra.mxu0 %v1002_v38 }
  0x38   : > { %916 = vmatpush3.bf16.msra.mxu1 %v1003_v39  ;;  %889 = vmatprep.subr.bf16.mxu0 %v1004_v40 }
  0x39   : > { %917 = vmatprep.subr.bf16.mxu1 %v1005_v41 }
  0x3b   : > { %890 = vmatpush3.bf16.msra.mxu0 %v1006_v42 }
  0x3c   : > { %918 = vmatpush3.bf16.msra.mxu1 %v1007_v43  ;;  %937 = vmatprep.subr.bf16.mxu0 %v1014_v48 }
  0x3e   : > { %611 = vmatmul.mubr.bf16.vlgmr.msra.gmra.mrb[0].mxu0 %v1008_v44 }
  0x3f   : > { %660 = vmatmul.mubr.bf16.vlgmr.msra.gmra.mrb[0].mxu1 %v1011_v46  ;;  %938 = vmatpush3.bf16.msra.mxu0 %v1014_v48 }
  0x40   : > { %939 = vmatprep.subr.bf16.mxu0 %v1015_v49  ;;  %618 = vmatprep.mubr.bf16.mxu0 %v1016_v50 }
  0x41   : > { %667 = vmatprep.mubr.bf16.mxu1 %v1018_v51 }
  0x43   : > { %940 = vmatpush3.bf16.msra.mxu0 %v1015_v49 }
  0x44   : > { %941 = vmatprep.subr.bf16.mxu0 %v1022_v53 }
  0x46   : > { %619 = vmatmul.mubr.bf16.gmra.mrb[4].mxu0 %v1020_v52 }
  0x47   : > { %668 = vmatmul.mubr.bf16.gmra.mrb[4].mxu1 %v1021_v54  ;;  %945 = vmatprep.mubr.msk.bf16.mxu0 %vm571_vm0, %v1024_v55 }
  0x48   : > { %942 = vmatpush3.bf16.msra.mxu0 %v1022_v53 }
  0x49   : > { %943 = vmatprep.subr.bf16.mxu0 %v1023_v56 }
  0x4c   : > { %944 = vmatpush3.bf16.msra.mxu0 %v1023_v56 }
  0x4f   : > { %946 = vmatmul.mubr.msk.bf16.vlgmr.msra.gmra.mrb[8].mxu0 %vm571_vm0, %v1025_v57 }
 0x111   : > { %v891_v58 = vpop.f32.mrb[0].mxu0 }
 0x112   : > { %v919_v59 = vpop.f32.mrb[0].mxu1  ;;  %v892_v60 = vpop.f32.mrb[1].mxu0 }
 0x113   : > { %v893_v61 = vadd.f32 %v892_v60, %v891_v58  ;;  %v920_v62 = vpop.f32.mrb[1].mxu1  ;;  %v894_v63 = vpop.f32.mrb[2].mxu0 }
 0x114   : > { %v921_v0 = vadd.f32 %v920_v62, %v919_v59  ;;  %v922_v1 = vpop.f32.mrb[2].mxu1  ;;  %v895_v2 = vpop.f32.mrb[3].mxu0 }
 0x115   : > { %v896_v3 = vadd.f32 %v895_v2, %v894_v63  ;;  %v923_v4 = vpop.f32.mrb[3].mxu1 }
 0x116   : > { %v924_v5 = vadd.f32 %v923_v4, %v922_v1  ;;  %v662_v6 = vadd.f32 %v921_v0, %v893_v61 }
 0x118   : > { %v665_v7 = vadd.f32 %v924_v5, %v896_v3 }
 0x119   : > { %v897_v8 = vpop.f32.mrb[4].mxu0 }
 0x11a   : > { %v925_v9 = vpop.f32.mrb[4].mxu1  ;;  %v898_v10 = vpop.f32.mrb[5].mxu0 }
 0x11b   : > { %v899_v11 = vadd.f32 %v898_v10, %v897_v8  ;;  %v926_v12 = vpop.f32.mrb[5].mxu1  ;;  %v900_v13 = vpop.f32.mrb[6].mxu0 }
 0x11c   : > { %v927_v14 = vadd.f32 %v926_v12, %v925_v9  ;;  %v928_v15 = vpop.f32.mrb[6].mxu1  ;;  %v901_v16 = vpop.f32.mrb[7].mxu0 }
 0x11d   : > { %v902_v17 = vadd.f32 %v901_v16, %v900_v13  ;;  %v929_v18 = vpop.f32.mrb[7].mxu1 }
 0x11e   : > { %v930_v19 = vadd.f32 %v929_v18, %v928_v15  ;;  %v670_v20 = vadd.f32 %v927_v14, %v899_v11 }
 0x120   : > { %v673_v21 = vadd.f32 %v930_v19, %v902_v17 }
 0x122   : > { %v947_v22 = vpop.f32.mrb[8].mxu0 }
 0x123   : > { %v719_v24 = vadd.f32 %v947_v22, %v670_v20  ;;  %v710_v25 = vpop.f32.mrb[9].mxu0 }
 0x124   : > { %v711_v26 = vadd.f32 %v710_v25, %v662_v6  ;;  %v948_v27 = vpop.f32.mrb[10].mxu0 }
 0x125   : > { %v736_v28 = vadd.f32 %v872_v23, %v719_v24  ;;  %v722_v29 = vadd.f32 %v948_v27, %v673_v21  ;;  %v713_v30 = vpop.f32.mrb[11].mxu0 }
 0x126   : > { %v732_v31 = vadd.f32 %v872_v23, %v711_v26  ;;  %v714_v32 = vadd.f32 %v713_v30, %v665_v7 }
 0x127   : > { %v738_v33 = vadd.f32 %v872_v23, %v722_v29  ;;  %v737_v35 = vmax.f32 %v736_v28, 0.0 }
 0x128   : > { %v734_v34 = vadd.f32 %v872_v23, %v714_v32  ;;  %v733_v37 = vmax.f32 %v732_v31, 0.0 }
 0x129   : > { %v739_v36 = vmax.f32 %v738_v33, 0.0 }
 0x12a   : > { %v735_v38 = vmax.f32 %v734_v34, 0.0 }
 0x12b   : > { %v741_v39 = vadd.f32 %v739_v36, %v737_v35 }
 0x12c   : > { %v740_v40 = vadd.f32 %v735_v38, %v733_v37 }
 0x12e   : > { %v742_v41 = vadd.f32 %v741_v39, %v740_v40 }
 0x130   : > { %v743_v42 = vmul.f32 0.25, %v742_v41 }
 0x132   : > { %v744_v43 = vpack.c.bf16 %v743_v42, %v743_v42 }
 0x134   : > { %745 = vst [vmem:[%s219_s21] sm:$0xf] %v744_v43 }
 0x135 PF: > { %p10_p9 = scmp.ge.s32.totalorder %s1087_s16, 4   ;;  %s1251_s12 = smov %s1044_s13 }
 0x136   : > { %s1252_s13 = smov %s1096_s19  ;;  %s1253_s14 = smov %s1087_s16 }
 0x137   :  { %12 = sbr.rel (!%p10_p9) target bundleno = 2 (0x2), region = 99 }

// kernel: lightweight_cnn_forward.7
= control target key start
LH: loop header
LB: loop body
LE: loop exit
PB: predicated region body
PF: predicated region fallthrough
CT: control target
= control target key end

     0   :  { %v163_v28 = vlaneseq  ;;  %v1194_v36 = vmov 1966171168   ;;  %s1503_s0 = inlined_call_operand.vmem [shape: bf16[2,1024], index: 0, kind: input, shape index: {}]   ;;  %s1504_s1 = inlined_call_operand.vmem [shape: bf16[1024,128], index: 1, kind: input, shape index: {}]   ;;  %s1505_s2 = inlined_call_operand.vmem [shape: f32[1,128], index: 2, kind: input, shape index: {}]   ;;  %s1506_s3 = inlined_call_operand.vmem [shape: f32[128,10], index: 3, kind: input, shape index: {}]   ;;  %s1507_s4 = inlined_call_operand.vmem [shape: f32[1,10], index: 4, kind: input, shape index: {}]   ;;  %s1508_s5 = inlined_call_operand.hbm [shape: f32[2,10], index: 5, kind: output, shape index: {}]  }
   0x1   :  { %v1105_v0 = vld [vmem:[%s1504_s1 + $0x40] sm:$0xff]   ;;  %v1109_v4 = vld [vmem:[%s1504_s1 + $0x48] sm:$0xff]   ;;  %v1113_v8 = vld [vmem:[%s1504_s1 + $0x50] sm:$0xff]   ;;  %v161_v37 = vunpack.c.l.s4 %v1194_v36 }
   0x2   :  { %v1106_v1 = vld [vmem:[%s1504_s1 + $0xc0] sm:$0xff]   ;;  %936 = vmatprep.subr.bf16.mxu0 %v1105_v0  ;;  %v1110_v5 = vld [vmem:[%s1504_s1 + $0xc8] sm:$0xff]   ;;  %v1114_v9 = vld [vmem:[%s1504_s1 + $0xd0] sm:$0xff]   ;;  %v164_v33 = vshrl.u32 %v163_v28, 7 }
   0x3   :  { %v1107_v2 = vld [vmem:[%s1504_s1] sm:$0xff]   ;;  %958 = vmatprep.subr.bf16.mxu1 %v1106_v1  ;;  %v1111_v6 = vld [vmem:[%s1504_s1 + $0x8] sm:$0xff]   ;;  %v1115_v10 = vld [vmem:[%s1504_s1 + $0x10] sm:$0xff]   ;;  %v162_v40 = vunpack.c.0.s8 %v161_v37 }
   0x4   :  { %v1108_v3 = vld [vmem:[%s1504_s1 + $0x80] sm:$0xff]   ;;  %937 = vmatpush3.bf16.msra.mxu0 %v1107_v2  ;;  %v1112_v7 = vld [vmem:[%s1504_s1 + $0x88] sm:$0xff]   ;;  %v1116_v11 = vld [vmem:[%s1504_s1 + $0x90] sm:$0xff]  }
   0x5   :  { %959 = vmatpush3.bf16.msra.mxu1 %v1108_v3  ;;  %938 = vmatprep.subr.bf16.mxu0 %v1109_v4  ;;  %v1117_v12 = vld [vmem:[%s1504_s1 + $0x58] sm:$0xff]   ;;  %v1121_v16 = vld [vmem:[%s1504_s1 + $0x60] sm:$0xff]   ;;  %v1125_v20 = vld [vmem:[%s1504_s1 + $0x68] sm:$0xff]   ;;  %v1334_v41 = vsub.s32 %v162_v40, %v164_v33 }
   0x6   :  { %960 = vmatprep.subr.bf16.mxu1 %v1110_v5  ;;  %v1118_v13 = vld [vmem:[%s1504_s1 + $0xd8] sm:$0xff]   ;;  %v1122_v17 = vld [vmem:[%s1504_s1 + $0xe0] sm:$0xff]   ;;  %v1126_v21 = vld [vmem:[%s1504_s1 + $0xe8] sm:$0xff]  }
   0x7   :  { %v1119_v14 = vld [vmem:[%s1504_s1 + $0x18] sm:$0xff]   ;;  %v1123_v18 = vld [vmem:[%s1504_s1 + $0x20] sm:$0xff]   ;;  %v1127_v22 = vld [vmem:[%s1504_s1 + $0x28] sm:$0xff]  }
   0x8   :  { %939 = vmatpush3.bf16.msra.mxu0 %v1111_v6  ;;  %v1120_v15 = vld [vmem:[%s1504_s1 + $0x98] sm:$0xff]   ;;  %v1124_v19 = vld [vmem:[%s1504_s1 + $0xa0] sm:$0xff]   ;;  %v1128_v23 = vld [vmem:[%s1504_s1 + $0xa8] sm:$0xff]  }
   0x9   :  { %961 = vmatpush3.bf16.msra.mxu1 %v1112_v7  ;;  %940 = vmatprep.subr.bf16.mxu0 %v1113_v8  ;;  %v1129_v24 = vld [vmem:[%s1504_s1 + $0x70] sm:$0xff]   ;;  %v1133_v29 = vld [vmem:[%s1504_s1 + $0x78] sm:$0xff]   ;;  %v22_v34 = vld [vmem:[%s1503_s0] sm:$0xff] }
   0xa   :  { %962 = vmatprep.subr.bf16.mxu1 %v1114_v9  ;;  %v1130_v25 = vld [vmem:[%s1504_s1 + $0xf0] sm:$0xff]   ;;  %v1134_v30 = vld [vmem:[%s1504_s1 + $0xf8] sm:$0xff]   ;;  %v1138_v35 = vld [vmem:[%s1504_s1 + $0x140] sm:$0xff]   ;;  %v159_v39 = vcombine.high %v22_v34, %v22_v34  ;;  %v166_v42 = vrot.slane %v22_v34, %v1334_v41 }
   0xb   :  { %v1131_v26 = vld [vmem:[%s1504_s1 + $0x30] sm:$0xff]   ;;  %v1135_v31 = vld [vmem:[%s1504_s1 + $0x38] sm:$0xff]   ;;  %v1139_v38 = vld [vmem:[%s1504_s1 + $0x1c0] sm:$0xff]  }
   0xc   :  { %941 = vmatpush3.bf16.msra.mxu0 %v1115_v10  ;;  %v1132_v27 = vld [vmem:[%s1504_s1 + $0xb0] sm:$0xff]   ;;  %v1136_v32 = vld [vmem:[%s1504_s1 + $0xb8] sm:$0xff]   ;;  %v1338_v43 = vrot.slane %v159_v39, %v1334_v41  ;;  %v174_v44 = vcombine.high %v166_v42, %v166_v42  ;;  %v182_v45 = vrot.slane %v166_v42, %v1334_v41  ;;  %v1140_v48 = vld [vmem:[%s1504_s1 + $0x100] sm:$0xff]  }
   0xd   :  { %963 = vmatpush3.bf16.msra.mxu1 %v1116_v11  ;;  %942 = vmatprep.subr.bf16.mxu0 %v1117_v12  ;;  %v1142_v51 = vld [vmem:[%s1504_s1 + $0x148] sm:$0xff]   ;;  %v1141_v53 = vld [vmem:[%s1504_s1 + $0x180] sm:$0xff]   ;;  %v1146_v57 = vld [vmem:[%s1504_s1 + $0x150] sm:$0xff]  }
   0xe   :  { %964 = vmatprep.subr.bf16.mxu1 %v1118_v13  ;;  %v175_v46 = vcombine.high %v1338_v43, %v1338_v43  ;;  %v196_v47 = vrot.slane %v174_v44, %v1334_v41  ;;  %v204_v50 = vcombine.high %v182_v45, %v182_v45  ;;  %v1143_v54 = vld [vmem:[%s1504_s1 + $0x1c8] sm:$0xff]   ;;  %v1147_v59 = vld [vmem:[%s1504_s1 + $0x1d0] sm:$0xff]   ;;  %v1150_v61 = vld [vmem:[%s1504_s1 + $0x158] sm:$0xff]  }
   0xf   :  { %v1144_v56 = vld [vmem:[%s1504_s1 + $0x108] sm:$0xff]   ;;  %v1148_v60 = vld [vmem:[%s1504_s1 + $0x110] sm:$0xff]   ;;  %v1151_v63 = vld [vmem:[%s1504_s1 + $0x1d8] sm:$0xff]  }
  0x10   :  { %943 = vmatpush3.bf16.msra.mxu0 %v1119_v14  ;;  %v203_v49 = vrot.slane %v175_v46, %v1334_v41  ;;  %632 = vmatprep.mubr.bf16.mxu0 %v196_v47  ;;  %v206_v52 = vcombine.high %v196_v47, %v196_v47  ;;  %v1145_v58 = vld [vmem:[%s1504_s1 + $0x188] sm:$0xff]   ;;  %v1149_v62 = vld [vmem:[%s1504_s1 + $0x190] sm:$0xff]   ;;  %v1152_v0 = vld [vmem:[%s1504_s1 + $0x118] sm:$0xff]  }
  0x11   :  { %965 = vmatpush3.bf16.msra.mxu1 %v1120_v15  ;;  %944 = vmatprep.subr.bf16.mxu0 %v1121_v16  ;;  %v1154_v1 = vld [vmem:[%s1504_s1 + $0x160] sm:$0xff]   ;;  %v1153_v2 = vld [vmem:[%s1504_s1 + $0x198] sm:$0xff]   ;;  %v1158_v5 = vld [vmem:[%s1504_s1 + $0x168] sm:$0xff]  }
  0x12   :  { %966 = vmatprep.subr.bf16.mxu1 %v1122_v17  ;;  %v207_v55 = vcombine.high %v203_v49, %v203_v49  ;;  %672 = vmatprep.mubr.bf16.mxu1 %v206_v52  ;;  %v1155_v3 = vld [vmem:[%s1504_s1 + $0x1e0] sm:$0xff]   ;;  %v1159_v7 = vld [vmem:[%s1504_s1 + $0x1e8] sm:$0xff]   ;;  %v1162_v9 = vld [vmem:[%s1504_s1 + $0x170] sm:$0xff]  }
  0x13   :  { %v1156_v4 = vld [vmem:[%s1504_s1 + $0x120] sm:$0xff]   ;;  %v1160_v8 = vld [vmem:[%s1504_s1 + $0x128] sm:$0xff]  }
  0x14   :  { %945 = vmatpush3.bf16.msra.mxu0 %v1123_v18  ;;  %v1157_v6 = vld [vmem:[%s1504_s1 + $0x1a0] sm:$0xff]  }
  0x15   :  { %967 = vmatpush3.bf16.msra.mxu1 %v1124_v19  ;;  %946 = vmatprep.subr.bf16.mxu0 %v1125_v20 }
  0x16   :  { %968 = vmatprep.subr.bf16.mxu1 %v1126_v21 }
  0x18   :  { %947 = vmatpush3.bf16.msra.mxu0 %v1127_v22 }
  0x19   :  { %969 = vmatpush3.bf16.msra.mxu1 %v1128_v23  ;;  %948 = vmatprep.subr.bf16.mxu0 %v1129_v24 }
  0x1a   :  { %970 = vmatprep.subr.bf16.mxu1 %v1130_v25 }
  0x1c   :  { %949 = vmatpush3.bf16.msra.mxu0 %v1131_v26 }
  0x1d   :  { %971 = vmatpush3.bf16.msra.mxu1 %v1132_v27  ;;  %950 = vmatprep.subr.bf16.mxu0 %v1133_v29 }
  0x1e   :  { %972 = vmatprep.subr.bf16.mxu1 %v1134_v30 }
  0x20   :  { %951 = vmatpush3.bf16.msra.mxu0 %v1135_v31 }
  0x21   :  { %973 = vmatpush3.bf16.msra.mxu1 %v1136_v32  ;;  %980 = vmatprep.subr.bf16.mxu0 %v1138_v35 }
  0x22   :  { %1002 = vmatprep.subr.bf16.mxu1 %v1139_v38 }
  0x23   :  { %633 = vmatmul.mubr.bf16.vlgmr.msra.gmra.mrb[0].mxu0 %v182_v45 }
  0x24   :  { %981 = vmatpush3.bf16.msra.mxu0 %v1140_v48  ;;  %673 = vmatmul.mubr.bf16.vlgmr.msra.gmra.mrb[0].mxu1 %v204_v50 }
  0x25   :  { %982 = vmatprep.subr.bf16.mxu0 %v1142_v51  ;;  %1003 = vmatpush3.bf16.msra.mxu1 %v1141_v53 }
  0x26   :  { %712 = vmatprep.mubr.bf16.mxu0 %v203_v49  ;;  %1004 = vmatprep.subr.bf16.mxu1 %v1143_v54 }
  0x27   :  { %752 = vmatprep.mubr.bf16.mxu1 %v207_v55 }
  0x28   :  { %983 = vmatpush3.bf16.msra.mxu0 %v1144_v56 }
  0x29   :  { %984 = vmatprep.subr.bf16.mxu0 %v1146_v57  ;;  %1005 = vmatpush3.bf16.msra.mxu1 %v1145_v58 }
  0x2a   :  { %1006 = vmatprep.subr.bf16.mxu1 %v1147_v59 }
  0x2c   :  { %985 = vmatpush3.bf16.msra.mxu0 %v1148_v60 }
  0x2d   :  { %986 = vmatprep.subr.bf16.mxu0 %v1150_v61  ;;  %1007 = vmatpush3.bf16.msra.mxu1 %v1149_v62 }
  0x2e   :  { %1008 = vmatprep.subr.bf16.mxu1 %v1151_v63 }
  0x30   :  { %987 = vmatpush3.bf16.msra.mxu0 %v1152_v0 }
  0x31   :  { %988 = vmatprep.subr.bf16.mxu0 %v1154_v1  ;;  %1009 = vmatpush3.bf16.msra.mxu1 %v1153_v2 }
  0x32   :  { %1010 = vmatprep.subr.bf16.mxu1 %v1155_v3 }
  0x34   :  { %989 = vmatpush3.bf16.msra.mxu0 %v1156_v4 }
  0x35   :  { %990 = vmatprep.subr.bf16.mxu0 %v1158_v5 }
  0x36   :  { %10 = vsyncpa [#allocation3], 0  ;;  %1011 = vmatpush3.bf16.msra.mxu1 %v1157_v6  ;;  %v1161_v10 = vld [vmem:[%s1504_s1 + $0x1a8] sm:$0xff]   ;;  %v1163_v11 = vld [vmem:[%s1504_s1 + $0x1f0] sm:$0xff]   ;;  %v189_v17 = vrot.slane %v1338_v43, %v1334_v41  ;;  %v1195_v23 = vmov 0.0|0.0   ;;  %vm1196_vm0 = vmmov 0  }
  0x37   :  { %1012 = vmatprep.subr.bf16.mxu1 %v1159_v7  ;;  %v1164_v12 = vld [vmem:[%s1504_s1 + $0x130] sm:$0xff]   ;;  %v1166_v13 = vld [vmem:[%s1504_s1 + $0x178] sm:$0xff]   ;;  %v761_v20 = vld [vmem:[%s1506_s3] sm:$0xff]  ;;  %v1197_v45 = vmov 0.0   ;;  %s1198_s26 = smov [#allocation2]   ;;  %vm854_vm1 = vcmask 74752  }
  0x38   :  { %991 = vmatpush3.bf16.msra.mxu0 %v1160_v8  ;;  %v1165_v14 = vld [vmem:[%s1504_s1 + $0x1b0] sm:$0xff]   ;;  %v1167_v15 = vld [vmem:[%s1504_s1 + $0x1f8] sm:$0xff]   ;;  %v205_v19 = vcombine.high %v189_v17, %v189_v17  ;;  %v762_v21 = vld [vmem:[%s1506_s3 + $0x8] sm:$0xff]  ;;  %s862_s27 = sshll.u32 %s1198_s26, 4  ;;  %s863_s27 = int_to_ptr.vmem [resolvable:$true] %s862_s27 }
  0x39   :  { %992 = vmatprep.subr.bf16.mxu0 %v1162_v9  ;;  %v1168_v16 = vld [vmem:[%s1504_s1 + $0x138] sm:$0xff]   ;;  %v763_v22 = vld [vmem:[%s1506_s3 + $0x10] sm:$0xff]  ;;  %v1077_v24 = vpack.c.bf16 %v762_v21, %v761_v20  ;;  %v765_v27 = vld [vmem:[%s1506_s3 + $0x20] sm:$0xff]  ;;  %s1170_s28 = scalar_lea.vmem %s863_s27, 32  ;;  %p1175_p1 = scmp.lt.s32.totalorder %s863_s27, %s863_s27 }
  0x3a   :  { %1013 = vmatpush3.bf16.msra.mxu1 %v1161_v10  ;;  %v1169_v18 = vld [vmem:[%s1504_s1 + $0x1b8] sm:$0xff]   ;;  %v766_v28 = vld [vmem:[%s1506_s3 + $0x28] sm:$0xff]  ;;  %v767_v30 = vld [vmem:[%s1506_s3 + $0x30] sm:$0xff]  ;;  %p1171_p0 = scmp.ne.s32.totalorder %s863_s27, %s1170_s28  ;;  %p1176_p2 = scmp.lt.s32.totalorder %s1170_s28, %s1170_s28 }
  0x3b   :  { %1014 = vmatprep.subr.bf16.mxu1 %v1163_v11  ;;  %v764_v25 = vld [vmem:[%s1506_s3 + $0x18] sm:$0xff]  ;;  %v1083_v29 = vpack.c.bf16 %v766_v28, %v765_v27  ;;  %v769_v33 = vld [vmem:[%s1506_s3 + $0x40] sm:$0xff]  ;;  %v770_v34 = vld [vmem:[%s1506_s3 + $0x48] sm:$0xff] }
  0x3c   :  { %993 = vmatpush3.bf16.msra.mxu0 %v1164_v12  ;;  %v1080_v26 = vpack.c.bf16 %v764_v25, %v763_v22  ;;  %v768_v31 = vld [vmem:[%s1506_s3 + $0x38] sm:$0xff]  ;;  %v1089_v35 = vpack.c.bf16 %v770_v34, %v769_v33  ;;  %v771_v36 = vld [vmem:[%s1506_s3 + $0x50] sm:$0xff]  ;;  %v773_v39 = vld [vmem:[%s1506_s3 + $0x60] sm:$0xff]  ;;  %p1177_p3 = por %p1176_p2, %p1175_p1 }
  0x3d   :  { %994 = vmatprep.subr.bf16.mxu0 %v1166_v13  ;;  %v1086_v32 = vpack.c.bf16 %v768_v31, %v767_v30  ;;  %v772_v37 = vld [vmem:[%s1506_s3 + $0x58] sm:$0xff]  ;;  %v774_v40 = vld [vmem:[%s1506_s3 + $0x68] sm:$0xff]  ;;  %v775_v42 = vld [vmem:[%s1506_s3 + $0x70] sm:$0xff] }
  0x3e   :  { %1015 = vmatpush3.bf16.msra.mxu1 %v1165_v14  ;;  %v1092_v38 = vpack.c.bf16 %v772_v37, %v771_v36  ;;  %v1095_v41 = vpack.c.bf16 %v774_v40, %v773_v39  ;;  %v776_v43 = vld [vmem:[%s1506_s3 + $0x78] sm:$0xff]  ;;  %v870_v47 = vld [vmem:[%s1505_s2] ss:$0 sm:$0xff]  ;;  %p1178_p4 = pnand %p1177_p3, %p1171_p0 }
  0x3f   :  { %1016 = vmatprep.subr.bf16.mxu1 %v1167_v15  ;;  %v1098_v44 = vpack.c.bf16 %v776_v43, %v775_v42  ;;  %v935_v8 = vld [vmem:[%s1507_s4] ss:$0 sm:$0xff] }
  0x40   :  { %995 = vmatpush3.bf16.msra.mxu0 %v1168_v16 }
  0x41   :  { %1076 = vmatprep.subr.bf16.mxu0 %v1195_v23 }
  0x42   :  { %1017 = vmatpush3.bf16.msra.mxu1 %v1169_v18 }
  0x43   :  { %713 = vmatmul.mubr.bf16.vlgmr.msra.gmra.mrb[4].mxu0 %v189_v17 }
  0x44   :  { %1078 = vmatpush3.bf16.msra.mxu0 %v1077_v24  ;;  %1073 = vmatprep.mubr.msk.f32.mxu0 %vm1196_vm0, %v1197_v45 }
  0x45   :  { %753 = vmatmul.mubr.bf16.vlgmr.msra.gmra.mrb[4].mxu1 %v205_v19  ;;  %1079 = vmatprep.subr.bf16.mxu0 %v1195_v23 }
  0x48   :  { %1081 = vmatpush3.bf16.msra.mxu0 %v1080_v26 }
  0x49   :  { %1082 = vmatprep.subr.bf16.mxu0 %v1195_v23 }
  0x4c   :  { %1084 = vmatpush3.bf16.msra.mxu0 %v1083_v29 }
  0x4d   :  { %1085 = vmatprep.subr.bf16.mxu0 %v1195_v23 }
  0x50   :  { %1087 = vmatpush3.bf16.msra.mxu0 %v1086_v32 }
  0x51   :  { %1088 = vmatprep.subr.bf16.mxu0 %v1195_v23 }
  0x54   :  { %1090 = vmatpush3.bf16.msra.mxu0 %v1089_v35 }
  0x55   :  { %1091 = vmatprep.subr.bf16.mxu0 %v1195_v23 }
  0x58   :  { %1093 = vmatpush3.bf16.msra.mxu0 %v1092_v38 }
  0x59   :  { %1094 = vmatprep.subr.bf16.mxu0 %v1195_v23 }
  0x5c   :  { %1096 = vmatpush3.bf16.msra.mxu0 %v1095_v41 }
  0x5d   :  { %1097 = vmatprep.subr.bf16.mxu0 %v1195_v23 }
  0x60   :  { %1099 = vmatpush3.bf16.msra.mxu0 %v1098_v44 }
  0xf6   :  { %v952_v46 = vpop.f32.mrb[0].mxu0 }
  0xf7   :  { %v953_v48 = vpop.f32.mrb[1].mxu0  ;;  %v974_v49 = vpop.f32.mrb[0].mxu1 }
  0xf8   :  { %v954_v50 = vadd.f32 %v953_v48, %v952_v46  ;;  %v955_v51 = vpop.f32.mrb[2].mxu0  ;;  %v975_v52 = vpop.f32.mrb[1].mxu1 }
  0xf9   :  { %v956_v53 = vpop.f32.mrb[3].mxu0  ;;  %v976_v55 = vadd.f32 %v975_v52, %v974_v49  ;;  %v977_v56 = vpop.f32.mrb[2].mxu1 }
  0xfa   :  { %v635_v54 = vadd.f32 %v954_v50, %v870_v47  ;;  %v978_v57 = vpop.f32.mrb[3].mxu1 }
  0xfc   :  { %v675_v58 = vadd.f32 %v976_v55, %v635_v54 }
 0x116   :  { %v996_v59 = vpop.f32.mrb[4].mxu0 }
 0x117   :  { %v997_v60 = vpop.f32.mrb[5].mxu0 }
 0x118   :  { %v1018_v61 = vpop.f32.mrb[4].mxu1  ;;  %v998_v62 = vadd.f32 %v997_v60, %v996_v59  ;;  %v999_v63 = vpop.f32.mrb[6].mxu0 }
 0x119   :  { %v1019_v0 = vpop.f32.mrb[5].mxu1  ;;  %v1000_v1 = vpop.f32.mrb[7].mxu0 }
 0x11a   :  { %v715_v2 = vadd.f32 %v998_v62, %v675_v58  ;;  %v1020_v3 = vadd.f32 %v1019_v0, %v1018_v61  ;;  %v1021_v4 = vpop.f32.mrb[6].mxu1 }
 0x11b   :  { %v1022_v5 = vpop.f32.mrb[7].mxu1 }
 0x11c   :  { %v755_v6 = vadd.f32 %v1020_v3, %v715_v2 }
 0x11e   :  { %v760_v7 = vmax.f32 %v755_v6, 0.0 }
 0x120   :  { %1074 = vmatmul.mubr.f32.vlgmr.msra.gmra.mrb[8].mxu0 %v760_v7 }
 0x1f3   :  { %v850_v9 = vpop.f32.mrb[8].mxu0 }
 0x1f4   :  { %v851_v10 = vadd.f32 %v935_v8, %v850_v9  ;;  %v1075_v11 = vpop.f32.mrb[9].mxu0 }
 0x1f6   :  { %855 = vst.msk [vmem:[#allocation2] sm:$0x3] %vm854_vm1, %v851_v10 }
 0x1f7   :  { %1181 = shalt.err (!%p1178_p4)
}
 0x1f8   :  { %s1182_s6 = scalar_lea.hbm %s1508_s5, 32 }
 0x1f9   :  { %p1183_p5 = scmp.ne.s32.totalorder %s1508_s5, %s1182_s6  ;;  %p1186_p6 = scmp.lt.u32.totalorder %s1182_s6, %s1508_s5 }
 0x1fb   :  { %p1188_p7 = pnand %p1186_p6, %p1183_p5 }
 0x1fd   :  { %1191 = shalt.err (!%p1188_p7)
}
 0x1fe   :  { %865 = dma.vmem_to_hbm [thread:$0]  %s863_s27, 32, %s1508_s5, [#allocation3]  }
 0x1ff   :  { %1192 = dma.done.wait [#allocation3], 32  }
 0x200   :  { %1193 = vsyncadd [#allocation3], 4294967264 }
 0x201   :  { %869 = vsyncpa [#allocation3], 1 }

</bundles_post_ra>
